<compile_context>
chip_gen: v7x
topology: tpu7x:2x2x1
jax: 0.10.0
libtpu: 0.0.40
codegen_flags: <defaults>
</compile_context>

<pallas_src>
import functools

import jax
import jax.numpy as jnp
import numpy as np
from jax.experimental import pallas as pl
from jax.experimental.pallas import tpu as pltpu


# ----------------------------------------------------------------------------
# Fused kernel: conv1(1x1)+BN+ReLU, SpatialAttention(7x7)+sigmoid, ChannelAttention
# ----------------------------------------------------------------------------
def _fused_kernel(x_ref, e_ref, w1_ref, b_ref, fc1_ref, fc2t_ref, sa_ref,
                  con_ref, a_ref, mpf_ref, *, W, LPAD):
    HW = x_ref.shape[2]
    f32 = jnp.float32

    # ---- stage 1: 1x1 conv == matmul over channels (bf16 MXU, f32 accumulate) ----
    # x arrives as f32 and is cast to bf16 HERE: avoids a separate HBM cast pass
    # (read 4B once instead of read 4B + write 2B + read 2B).
    x = x_ref[0].astype(jnp.bfloat16)                                 # (C2, HW)
    y = jnp.dot(w1_ref[...], x, preferred_element_type=f32)           # (C, HW) f32
    y = jnp.maximum(y + b_ref[...], 0.0)                              # folded conv-bias+BN, ReLU

    # ---- stage 2: SpatialAttention -------------------------------------------
    # channel-max of layers_*edge, kept flat & lane-dense: (1, HW)
    m = jnp.max(y * e_ref[0], axis=0, keepdims=True)
    # Zero ONLY the two pad regions (not the whole scratch).  Done every step (cheap:
    # 2*LPAD floats) rather than gated on program_id==0, because on megacore the grid
    # is sharded and each TensorCore owns its own (uninitialized) scratch.
    zpad = jnp.zeros((1, LPAD), f32)
    mpf_ref[0:1, 0:LPAD] = zpad
    mpf_ref[0:1, LPAD + HW:2 * LPAD + HW] = zpad
    mpf_ref[0:1, LPAD:LPAD + HW] = m                                  # interior fully overwritten

    # column index of each lane, computed in-kernel (no HBM input needed)
    col = jax.lax.broadcasted_iota(jnp.int32, (1, HW), 1) % W
    acc = jnp.zeros((1, HW), f32)
    # 7x7 conv: each tap is a static lane-offset window of the padded flat map.
    # Row out-of-range is covered by the zero pads; column wrap is handled by ONE
    # mask per rx (hoisted out of the ry loop: 6 masks instead of 42).
    for rx in range(-3, 4):
        part = jnp.zeros((1, HW), f32)
        for ry in range(-3, 4):
            k = sa_ref[(ry + 3) * 7 + (rx + 3)]                       # SMEM scalar tap weight
            lo = LPAD + ry * W + rx
            part = part + mpf_ref[0:1, lo:lo + HW] * k
        if rx > 0:
            part = jnp.where(col < (W - rx), part, 0.0)
        elif rx < 0:
            part = jnp.where(col >= (-rx), part, 0.0)
        acc = acc + part
    sat = jax.nn.sigmoid(acc)                                         # (1, HW)
    # TODO(synk): for production HW, keep the padded max-map 2D (H+6, Wpad) so ry/rx
    # become sublane/lane slices on fully-packed vregs (8x less VALU work, no masks).

    # ---- stage 3: layer_SAT + ChannelAttention (VPU broadcast-mul + reduce) ----
    t = y * (1.0 + sat)                                               # == layers_ + layers_*SAT
    pooled = jnp.max(t, axis=1, keepdims=True)                        # AdaptiveMaxPool2d(1) -> (C, 1)
    h = jnp.maximum(jnp.sum(fc1_ref[...] * pooled, axis=0, keepdims=True), 0.0)   # (1, Ch)
    cat = jax.nn.sigmoid(jnp.sum(fc2t_ref[...] * h, axis=1, keepdims=True))       # (C, 1)

    con_ref[0] = (y * cat).astype(con_ref.dtype)                      # (C, HW) bf16, lane-dense
    a_ref[0] = sat                                                    # (1, HW) f32, lane-dense


# ----------------------------------------------------------------------------
# Wrapper (glue: interpolation, BN folding, weight re-orientation, reshapes)
# ----------------------------------------------------------------------------
def agg_local_forward(params, att_edg, layers_size, layers, *, con_dtype=jnp.bfloat16):
    H, W = layers_size
    B, C2, Hl, Wl = layers.shape
    assert (Hl, Wl) == (H, W)
    C = C2 // 2
    Ch = max(C // 16, 1)
    HW = H * W
    f32 = jnp.float32
    LPAD = ((3 * W + 3 + 127) // 128) * 128        # flat pad (>= 3*W+3), lane-aligned

    # F.interpolate(..., mode='bilinear', align_corners=False)   (glue)
    edge = jax.image.resize(att_edg.astype(f32), (B, 1, H, W), method="bilinear")

    # channels-first flat slabs — pure reshapes of NCHW, no HBM transpose/cast passes
    x = layers.astype(f32).reshape(B, C2, HW)                # f32 in; bf16 cast done in-kernel
    e = edge.reshape(B, 1, HW)

    # Fold conv1 bias + BatchNorm into the weight / a per-channel bias.
    # TODO(synk): PyTorch default (train-mode) BN uses batch statistics; this
    # implements eval-mode BN with running stats.
    inv = params["bn_gamma"] / jnp.sqrt(params["bn_var"] + 1e-5)
    w1t = (params["conv1_w"] * inv[None, :]).T.astype(jnp.bfloat16)          # (C, C2)
    bias = ((params["conv1_b"] - params["bn_mean"]) * inv
            + params["bn_beta"]).reshape(C, 1).astype(f32)                   # (C, 1)
    fc1 = params["fc1_w"].astype(f32)                                        # (C, Ch)
    fc2t = params["fc2_w"].T.astype(f32)                                     # (C, Ch)
    sa = params["sa_w"].reshape(49).astype(f32)                              # SMEM scalars

    # VMEM budget estimate: double-buffered per-step blocks + resident weights + scratch.
    out_isz = jnp.dtype(con_dtype).itemsize
    vmem_est = (2 * (C2 * HW * 4 + HW * 4 + C * HW * out_isz + HW * 4)
                + C * C2 * 2 + C * 4 + 2 * C * Ch * 4 + (2 * LPAD + HW) * 4)
    vmem_limit = int(min(96 << 20, max(2 * vmem_est, 8 << 20)))

    # TODO(synk): for production sizes (large HW / C) add an HW-tile grid axis with a
    # carried running max for the global pool (mandatory on v7x, 64 MiB VMEM); at tiny
    # B, B could instead be folded into one grid step to amortize per-step overhead,
    # but grid=(B,) parallel is kept so both v7x TensorCores get work when B>=2.
    con, a = pl.pallas_call(
        functools.partial(_fused_kernel, W=W, LPAD=LPAD),
        out_shape=(jax.ShapeDtypeStruct((B, C, HW), con_dtype),
                   jax.ShapeDtypeStruct((B, 1, HW), f32)),
        grid=(B,),
        in_specs=[
            pl.BlockSpec((1, C2, HW), lambda b: (b, 0, 0)),                  # x (f32)
            pl.BlockSpec((1, 1, HW), lambda b: (b, 0, 0)),                   # edge
            pl.BlockSpec((C, C2), lambda b: (0, 0)),                         # folded W1^T (bf16)
            pl.BlockSpec((C, 1), lambda b: (0, 0)),                          # folded bias
            pl.BlockSpec((C, Ch), lambda b: (0, 0)),                         # fc1 (C, Ch)
            pl.BlockSpec((C, Ch), lambda b: (0, 0)),                         # fc2^T (C, Ch)
            pl.BlockSpec(memory_space=pltpu.MemorySpace.SMEM),               # 7x7 taps (49,)
        ],
        out_specs=(pl.BlockSpec((1, C, HW), lambda b: (b, 0, 0)),
                   pl.BlockSpec((1, 1, HW), lambda b: (b, 0, 0))),
        scratch_shapes=[pltpu.VMEM((1, 2 * LPAD + HW), jnp.float32)],
        compiler_params=pltpu.CompilerParams(
            dimension_semantics=("parallel",),
            vmem_limit_bytes=vmem_limit),
    )(x, e, w1t, bias, fc1, fc2t, sa)

    return con.reshape(B, C, H, W), a.reshape(B, 1, H, W)


# Pure-JAX reference (same math, no Pallas) for a sanity check.
def reference(params, att_edg, layers_size, layers):
    H, W = layers_size
    B, C2, _, _ = layers.shape
    edge = jax.image.resize(att_edg.astype(jnp.float32), (B, 1, H, W), method="bilinear")
    x = jnp.transpose(layers.astype(jnp.float32), (0, 2, 3, 1))
    y = jnp.einsum("bhwc,cd->bhwd", x, params["conv1_w"]) + params["conv1_b"]
    inv = params["bn_gamma"] / jnp.sqrt(params["bn_var"] + 1e-5)
    y = (y - params["bn_mean"]) * inv + params["bn_beta"]
    y = jnp.maximum(y, 0.0)
    e = jnp.transpose(edge, (0, 2, 3, 1))
    m = jnp.max(y * e, axis=-1)
    mp = jnp.pad(m, ((0, 0), (3, 3), (3, 3)))
    sat = jnp.zeros((B, H, W), jnp.float32)
    for dy in range(7):
        for dx in range(7):
            sat = sat + mp[:, dy:dy + H, dx:dx + W] * params["sa_w"][dy, dx]
    sat = jax.nn.sigmoid(sat)[..., None]
    ls = y + y * sat
    pooled = jnp.max(ls, axis=(1, 2))
    h = jnp.maximum(pooled @ params["fc1_w"], 0.0)
    cat = jax.nn.sigmoid(h @ params["fc2_w"])
    con = y * cat[:, None, None, :]
    return jnp.transpose(con, (0, 3, 1, 2)), jnp.transpose(sat, (0, 3, 1, 2))


def init_params(key, inplanes):
    C = inplanes
    C2 = 2 * C
    Ch = max(C // 16, 1)
    ks = jax.random.split(key, 5)
    return {
        "conv1_w": jax.random.normal(ks[0], (C2, C), jnp.float32) * 0.1,
        "conv1_b": jax.random.normal(ks[1], (C,), jnp.float32) * 0.1,
        "bn_gamma": jnp.ones((C,), jnp.float32),
        "bn_beta": jnp.zeros((C,), jnp.float32),
        "bn_mean": jnp.zeros((C,), jnp.float32),
        "bn_var": jnp.ones((C,), jnp.float32),
        "sa_w": jax.random.normal(ks[2], (7, 7), jnp.float32) * 0.05,
        "fc1_w": jax.random.normal(ks[3], (C, Ch), jnp.float32) * 0.1,
        "fc2_w": jax.random.normal(ks[4], (Ch, C), jnp.float32) * 0.1,
    }


if __name__ == "__main__":
    key = jax.random.PRNGKey(0)
    inplanes = 32          # ChannelAttention needs inplanes // 16 >= 1
    B, H, W = 2, 16, 16
    k_params, k_edge, k_layers = jax.random.split(key, 3)

    params = init_params(k_params, inplanes)
    att_edg = jax.random.normal(k_edge, (B, 1, 8, 8), jnp.float32)
    layers = jax.random.normal(k_layers, (B, 2 * inplanes, H, W), jnp.float32)

    con, a = agg_local_forward(params, att_edg, (H, W), layers)
    jax.block_until_ready((con, a))

    con_ref, a_ref = reference(params, att_edg, (H, W), layers)
    np.testing.assert_allclose(np.asarray(con.astype(jnp.float32)),
                               np.asarray(con_ref), rtol=2e-2, atol=2e-2)
    np.testing.assert_allclose(np.asarray(a), np.asarray(a_ref), rtol=2e-2, atol=2e-2)

    print("KERNEL_OK")
</pallas_src>

<mosaic_0001>
module attributes {stable_mosaic.version = 11 : i64} {
  func.func @_fused_kernel(%arg0: i32, %arg1: memref<1x64x256xf32, #tpu.memory_space<vmem>>, %arg2: memref<1x1x256xf32, #tpu.memory_space<vmem>>, %arg3: memref<32x64xbf16, #tpu.memory_space<vmem>>, %arg4: memref<32x1xf32, #tpu.memory_space<vmem>>, %arg5: memref<32x2xf32, #tpu.memory_space<vmem>>, %arg6: memref<32x2xf32, #tpu.memory_space<vmem>>, %arg7: memref<49xf32, #tpu.memory_space<smem>>, %arg8: memref<1x32x256xbf16, #tpu.memory_space<vmem>>, %arg9: memref<1x1x256xf32, #tpu.memory_space<vmem>>, %arg10: memref<1x512xf32, #tpu.memory_space<vmem>>) attributes {dimension_semantics = [#tpu.dimension_semantics<parallel>], iteration_bounds = array<i64: 2>, scalar_prefetch = 0 : i64, scratch_operands = 1 : i64, tpu.core_type = #tpu.core_type<tc>, window_params = [{transform_indices = @transform_0, window_bounds = array<i64: 1, 64, 256>}, {transform_indices = @transform_1, window_bounds = array<i64: 1, 1, 256>}, {pipeline_mode = #tpu.pipeline_mode<synchronous>, transform_indices = @transform_2, window_bounds = array<i64: 32, 64>}, {pipeline_mode = #tpu.pipeline_mode<synchronous>, transform_indices = @transform_3, window_bounds = array<i64: 32, 1>}, {pipeline_mode = #tpu.pipeline_mode<synchronous>, transform_indices = @transform_4, window_bounds = array<i64: 32, 2>}, {pipeline_mode = #tpu.pipeline_mode<synchronous>, transform_indices = @transform_5, window_bounds = array<i64: 32, 2>}, {transform_indices = @transform_6, window_bounds = array<i64: 49>}, {transform_indices = @transform_7, window_bounds = array<i64: 1, 32, 256>}, {transform_indices = @transform_8, window_bounds = array<i64: 1, 1, 256>}]} {
    %c0 = arith.constant 0 : index
    %c0_0 = arith.constant 0 : index
    %c0_1 = arith.constant 0 : index
    %0 = vector.load %arg1[%c0, %c0_0, %c0_1] : memref<1x64x256xf32, #tpu.memory_space<vmem>>, vector<1x64x256xf32>
    %1 = vector.shape_cast %0 : vector<1x64x256xf32> to vector<64x256xf32>
    %2 = arith.truncf %1 : vector<64x256xf32> to vector<64x256xbf16>
    %c0_2 = arith.constant 0 : index
    %c0_3 = arith.constant 0 : index
    %3 = vector.load %arg3[%c0_2, %c0_3] : memref<32x64xbf16, #tpu.memory_space<vmem>>, vector<32x64xbf16>
    %cst = arith.constant dense<0.000000e+00> : vector<32x256xf32>
    %4 = tpu.matmul %3, %2, %cst {dimension_numbers = #tpu.dot_dimension_numbers<[1], [0], [0], [1], [0, 0, 1, 1], [], []>} : vector<32x64xbf16>, vector<64x256xbf16>, vector<32x256xf32> -> vector<32x256xf32>
    %c0_4 = arith.constant 0 : index
    %c0_5 = arith.constant 0 : index
    %5 = vector.load %arg4[%c0_4, %c0_5] : memref<32x1xf32, #tpu.memory_space<vmem>>, vector<32x1xf32>
    %6 = vector.broadcast %5 : vector<32x1xf32> to vector<32x256xf32>
    %7 = arith.addf %4, %6 : vector<32x256xf32>
    %cst_6 = arith.constant 0.000000e+00 : f32
    %8 = vector.broadcast %cst_6 : f32 to vector<32x256xf32>
    %9 = arith.maximumf %7, %8 : vector<32x256xf32>
    %c0_7 = arith.constant 0 : index
    %c0_8 = arith.constant 0 : index
    %c0_9 = arith.constant 0 : index
    %10 = vector.load %arg2[%c0_7, %c0_8, %c0_9] : memref<1x1x256xf32, #tpu.memory_space<vmem>>, vector<1x1x256xf32>
    %11 = vector.shape_cast %10 : vector<1x1x256xf32> to vector<1x256xf32>
    %12 = vector.broadcast %11 : vector<1x256xf32> to vector<32x256xf32>
    %13 = arith.mulf %9, %12 : vector<32x256xf32>
    %cst_10 = arith.constant dense<0xFF800000> : vector<256xf32>
    %14 = vector.multi_reduction <maximumf>, %13, %cst_10 [0] : vector<32x256xf32> to vector<256xf32>
    %15 = vector.shape_cast %14 : vector<256xf32> to vector<1x256xf32>
    %cst_11 = arith.constant 0.000000e+00 : f32
    %16 = vector.broadcast %cst_11 : f32 to vector<1x128xf32>
    %c0_12 = arith.constant 0 : index
    %c0_13 = arith.constant 0 : index
    %17 = vector.load %arg10[%c0_12, %c0_13] : memref<1x512xf32, #tpu.memory_space<vmem>>, vector<1x128xf32>
    tpu.vector_store %arg10[%c0_12, %c0_13], %16 {strides = array<i32>} : memref<1x512xf32, #tpu.memory_space<vmem>>, vector<1x128xf32>,
    %c0_14 = arith.constant 0 : index
    %c384 = arith.constant 384 : index
    %18 = vector.load %arg10[%c0_14, %c384] : memref<1x512xf32, #tpu.memory_space<vmem>>, vector<1x128xf32>
    tpu.vector_store %arg10[%c0_14, %c384], %16 {strides = array<i32>} : memref<1x512xf32, #tpu.memory_space<vmem>>, vector<1x128xf32>,
    %c0_15 = arith.constant 0 : index
    %c128 = arith.constant 128 : index
    %19 = vector.load %arg10[%c0_15, %c128] : memref<1x512xf32, #tpu.memory_space<vmem>>, vector<1x256xf32>
    tpu.vector_store %arg10[%c0_15, %c128], %15 {strides = array<i32>} : memref<1x512xf32, #tpu.memory_space<vmem>>, vector<1x256xf32>,
    %20 = tpu.iota {dimensions = array<i32: 1>} : vector<1x256xi32>
    %c16_i32 = arith.constant 16 : i32
    %c0_i32 = arith.constant 0 : i32
    %21 = arith.cmpi eq, %c16_i32, %c0_i32 : i32
    %c1_i32 = arith.constant 1 : i32
    %22 = arith.select %21, %c1_i32, %c16_i32 : i32
    %23 = vector.broadcast %22 : i32 to vector<1x256xi32>
    %24 = arith.remsi %20, %23 : vector<1x256xi32>
    %c0_i32_16 = arith.constant 0 : i32
    %25 = vector.broadcast %c0_i32_16 : i32 to vector<1x256xi32>
    %26 = arith.cmpi ne, %24, %25 : vector<1x256xi32>
    %c0_i32_17 = arith.constant 0 : i32
    %27 = vector.broadcast %c0_i32_17 : i32 to vector<1x256xi32>
    %28 = arith.cmpi slt, %24, %27 : vector<1x256xi32>
    %c0_i32_18 = arith.constant 0 : i32
    %29 = arith.cmpi slt, %22, %c0_i32_18 : i32
    %30 = vector.broadcast %29 : i1 to vector<1x256xi1>
    %31 = vector.broadcast %30 : vector<1x256xi1> to vector<1x256xi1>
    %32 = arith.xori %28, %31 : vector<1x256xi1>
    %33 = arith.andi %32, %26 : vector<1x256xi1>
    %34 = vector.broadcast %22 : i32 to vector<1x256xi32>
    %35 = arith.addi %24, %34 : vector<1x256xi32>
    %36 = arith.select %33, %35, %24 : vector<1x256xi1>, vector<1x256xi32>
    %cst_19 = arith.constant 0.000000e+00 : f32
    %37 = vector.broadcast %cst_19 : f32 to vector<1x256xf32>
    %cst_20 = arith.constant 0.000000e+00 : f32
    %38 = vector.broadcast %cst_20 : f32 to vector<1x256xf32>
    %c0_21 = arith.constant 0 : index
    %39 = memref.load %arg7[%c0_21] : memref<49xf32, #tpu.memory_space<smem>>
    %c0_22 = arith.constant 0 : index
    %c77 = arith.constant 77 : index
    %40 = vector.load %arg10[%c0_22, %c77] : memref<1x512xf32, #tpu.memory_space<vmem>>, vector<1x256xf32>
    %41 = vector.broadcast %39 : f32 to vector<1x256xf32>
    %42 = arith.mulf %40, %41 : vector<1x256xf32>
    %43 = arith.addf %38, %42 : vector<1x256xf32>
    %c7 = arith.constant 7 : index
    %44 = memref.load %arg7[%c7] : memref<49xf32, #tpu.memory_space<smem>>
    %c0_23 = arith.constant 0 : index
    %c93 = arith.constant 93 : index
    %45 = vector.load %arg10[%c0_23, %c93] : memref<1x512xf32, #tpu.memory_space<vmem>>, vector<1x256xf32>
    %46 = vector.broadcast %44 : f32 to vector<1x256xf32>
    %47 = arith.mulf %45, %46 : vector<1x256xf32>
    %48 = arith.addf %43, %47 : vector<1x256xf32>
    %c14 = arith.constant 14 : index
    %49 = memref.load %arg7[%c14] : memref<49xf32, #tpu.memory_space<smem>>
    %c0_24 = arith.constant 0 : index
    %c109 = arith.constant 109 : index
    %50 = vector.load %arg10[%c0_24, %c109] : memref<1x512xf32, #tpu.memory_space<vmem>>, vector<1x256xf32>
    %51 = vector.broadcast %49 : f32 to vector<1x256xf32>
    %52 = arith.mulf %50, %51 : vector<1x256xf32>
    %53 = arith.addf %48, %52 : vector<1x256xf32>
    %c21 = arith.constant 21 : index
    %54 = memref.load %arg7[%c21] : memref<49xf32, #tpu.memory_space<smem>>
    %c0_25 = arith.constant 0 : index
    %c125 = arith.constant 125 : index
    %55 = vector.load %arg10[%c0_25, %c125] : memref<1x512xf32, #tpu.memory_space<vmem>>, vector<1x256xf32>
    %56 = vector.broadcast %54 : f32 to vector<1x256xf32>
    %57 = arith.mulf %55, %56 : vector<1x256xf32>
    %58 = arith.addf %53, %57 : vector<1x256xf32>
    %c28 = arith.constant 28 : index
    %59 = memref.load %arg7[%c28] : memref<49xf32, #tpu.memory_space<smem>>
    %c0_26 = arith.constant 0 : index
    %c141 = arith.constant 141 : index
    %60 = vector.load %arg10[%c0_26, %c141] : memref<1x512xf32, #tpu.memory_space<vmem>>, vector<1x256xf32>
    %61 = vector.broadcast %59 : f32 to vector<1x256xf32>
    %62 = arith.mulf %60, %61 : vector<1x256xf32>
    %63 = arith.addf %58, %62 : vector<1x256xf32>
    %c35 = arith.constant 35 : index
    %64 = memref.load %arg7[%c35] : memref<49xf32, #tpu.memory_space<smem>>
    %c0_27 = arith.constant 0 : index
    %c157 = arith.constant 157 : index
    %65 = vector.load %arg10[%c0_27, %c157] : memref<1x512xf32, #tpu.memory_space<vmem>>, vector<1x256xf32>
    %66 = vector.broadcast %64 : f32 to vector<1x256xf32>
    %67 = arith.mulf %65, %66 : vector<1x256xf32>
    %68 = arith.addf %63, %67 : vector<1x256xf32>
    %c42 = arith.constant 42 : index
    %69 = memref.load %arg7[%c42] : memref<49xf32, #tpu.memory_space<smem>>
    %c0_28 = arith.constant 0 : index
    %c173 = arith.constant 173 : index
    %70 = vector.load %arg10[%c0_28, %c173] : memref<1x512xf32, #tpu.memory_space<vmem>>, vector<1x256xf32>
    %71 = vector.broadcast %69 : f32 to vector<1x256xf32>
    %72 = arith.mulf %70, %71 : vector<1x256xf32>
    %73 = arith.addf %68, %72 : vector<1x256xf32>
    %c3_i32 = arith.constant 3 : i32
    %74 = vector.broadcast %c3_i32 : i32 to vector<1x256xi32>
    %75 = arith.cmpi sge, %36, %74 : vector<1x256xi32>
    %cst_29 = arith.constant 0.000000e+00 : f32
    %76 = vector.broadcast %cst_29 : f32 to vector<1x256xf32>
    %77 = arith.select %75, %73, %76 : vector<1x256xi1>, vector<1x256xf32>
    %78 = arith.addf %37, %77 : vector<1x256xf32>
    %cst_30 = arith.constant 0.000000e+00 : f32
    %79 = vector.broadcast %cst_30 : f32 to vector<1x256xf32>
    %c1 = arith.constant 1 : index
    %80 = memref.load %arg7[%c1] : memref<49xf32, #tpu.memory_space<smem>>
    %c0_31 = arith.constant 0 : index
    %c78 = arith.constant 78 : index
    %81 = vector.load %arg10[%c0_31, %c78] : memref<1x512xf32, #tpu.memory_space<vmem>>, vector<1x256xf32>
    %82 = vector.broadcast %80 : f32 to vector<1x256xf32>
    %83 = arith.mulf %81, %82 : vector<1x256xf32>
    %84 = arith.addf %79, %83 : vector<1x256xf32>
    %c8 = arith.constant 8 : index
    %85 = memref.load %arg7[%c8] : memref<49xf32, #tpu.memory_space<smem>>
    %c0_32 = arith.constant 0 : index
    %c94 = arith.constant 94 : index
    %86 = vector.load %arg10[%c0_32, %c94] : memref<1x512xf32, #tpu.memory_space<vmem>>, vector<1x256xf32>
    %87 = vector.broadcast %85 : f32 to vector<1x256xf32>
    %88 = arith.mulf %86, %87 : vector<1x256xf32>
    %89 = arith.addf %84, %88 : vector<1x256xf32>
    %c15 = arith.constant 15 : index
    %90 = memref.load %arg7[%c15] : memref<49xf32, #tpu.memory_space<smem>>
    %c0_33 = arith.constant 0 : index
    %c110 = arith.constant 110 : index
    %91 = vector.load %arg10[%c0_33, %c110] : memref<1x512xf32, #tpu.memory_space<vmem>>, vector<1x256xf32>
    %92 = vector.broadcast %90 : f32 to vector<1x256xf32>
    %93 = arith.mulf %91, %92 : vector<1x256xf32>
    %94 = arith.addf %89, %93 : vector<1x256xf32>
    %c22 = arith.constant 22 : index
    %95 = memref.load %arg7[%c22] : memref<49xf32, #tpu.memory_space<smem>>
    %c0_34 = arith.constant 0 : index
    %c126 = arith.constant 126 : index
    %96 = vector.load %arg10[%c0_34, %c126] : memref<1x512xf32, #tpu.memory_space<vmem>>, vector<1x256xf32>
    %97 = vector.broadcast %95 : f32 to vector<1x256xf32>
    %98 = arith.mulf %96, %97 : vector<1x256xf32>
    %99 = arith.addf %94, %98 : vector<1x256xf32>
    %c29 = arith.constant 29 : index
    %100 = memref.load %arg7[%c29] : memref<49xf32, #tpu.memory_space<smem>>
    %c0_35 = arith.constant 0 : index
    %c142 = arith.constant 142 : index
    %101 = vector.load %arg10[%c0_35, %c142] : memref<1x512xf32, #tpu.memory_space<vmem>>, vector<1x256xf32>
    %102 = vector.broadcast %100 : f32 to vector<1x256xf32>
    %103 = arith.mulf %101, %102 : vector<1x256xf32>
    %104 = arith.addf %99, %103 : vector<1x256xf32>
    %c36 = arith.constant 36 : index
    %105 = memref.load %arg7[%c36] : memref<49xf32, #tpu.memory_space<smem>>
    %c0_36 = arith.constant 0 : index
    %c158 = arith.constant 158 : index
    %106 = vector.load %arg10[%c0_36, %c158] : memref<1x512xf32, #tpu.memory_space<vmem>>, vector<1x256xf32>
    %107 = vector.broadcast %105 : f32 to vector<1x256xf32>
    %108 = arith.mulf %106, %107 : vector<1x256xf32>
    %109 = arith.addf %104, %108 : vector<1x256xf32>
    %c43 = arith.constant 43 : index
    %110 = memref.load %arg7[%c43] : memref<49xf32, #tpu.memory_space<smem>>
    %c0_37 = arith.constant 0 : index
    %c174 = arith.constant 174 : index
    %111 = vector.load %arg10[%c0_37, %c174] : memref<1x512xf32, #tpu.memory_space<vmem>>, vector<1x256xf32>
    %112 = vector.broadcast %110 : f32 to vector<1x256xf32>
    %113 = arith.mulf %111, %112 : vector<1x256xf32>
    %114 = arith.addf %109, %113 : vector<1x256xf32>
    %c2_i32 = arith.constant 2 : i32
    %115 = vector.broadcast %c2_i32 : i32 to vector<1x256xi32>
    %116 = arith.cmpi sge, %36, %115 : vector<1x256xi32>
    %cst_38 = arith.constant 0.000000e+00 : f32
    %117 = vector.broadcast %cst_38 : f32 to vector<1x256xf32>
    %118 = arith.select %116, %114, %117 : vector<1x256xi1>, vector<1x256xf32>
    %119 = arith.addf %78, %118 : vector<1x256xf32>
    %cst_39 = arith.constant 0.000000e+00 : f32
    %120 = vector.broadcast %cst_39 : f32 to vector<1x256xf32>
    %c2 = arith.constant 2 : index
    %121 = memref.load %arg7[%c2] : memref<49xf32, #tpu.memory_space<smem>>
    %c0_40 = arith.constant 0 : index
    %c79 = arith.constant 79 : index
    %122 = vector.load %arg10[%c0_40, %c79] : memref<1x512xf32, #tpu.memory_space<vmem>>, vector<1x256xf32>
    %123 = vector.broadcast %121 : f32 to vector<1x256xf32>
    %124 = arith.mulf %122, %123 : vector<1x256xf32>
    %125 = arith.addf %120, %124 : vector<1x256xf32>
    %c9 = arith.constant 9 : index
    %126 = memref.load %arg7[%c9] : memref<49xf32, #tpu.memory_space<smem>>
    %c0_41 = arith.constant 0 : index
    %c95 = arith.constant 95 : index
    %127 = vector.load %arg10[%c0_41, %c95] : memref<1x512xf32, #tpu.memory_space<vmem>>, vector<1x256xf32>
    %128 = vector.broadcast %126 : f32 to vector<1x256xf32>
    %129 = arith.mulf %127, %128 : vector<1x256xf32>
    %130 = arith.addf %125, %129 : vector<1x256xf32>
    %c16 = arith.constant 16 : index
    %131 = memref.load %arg7[%c16] : memref<49xf32, #tpu.memory_space<smem>>
    %c0_42 = arith.constant 0 : index
    %c111 = arith.constant 111 : index
    %132 = vector.load %arg10[%c0_42, %c111] : memref<1x512xf32, #tpu.memory_space<vmem>>, vector<1x256xf32>
    %133 = vector.broadcast %131 : f32 to vector<1x256xf32>
    %134 = arith.mulf %132, %133 : vector<1x256xf32>
    %135 = arith.addf %130, %134 : vector<1x256xf32>
    %c23 = arith.constant 23 : index
    %136 = memref.load %arg7[%c23] : memref<49xf32, #tpu.memory_space<smem>>
    %c0_43 = arith.constant 0 : index
    %c127 = arith.constant 127 : index
    %137 = vector.load %arg10[%c0_43, %c127] : memref<1x512xf32, #tpu.memory_space<vmem>>, vector<1x256xf32>
    %138 = vector.broadcast %136 : f32 to vector<1x256xf32>
    %139 = arith.mulf %137, %138 : vector<1x256xf32>
    %140 = arith.addf %135, %139 : vector<1x256xf32>
    %c30 = arith.constant 30 : index
    %141 = memref.load %arg7[%c30] : memref<49xf32, #tpu.memory_space<smem>>
    %c0_44 = arith.constant 0 : index
    %c143 = arith.constant 143 : index
    %142 = vector.load %arg10[%c0_44, %c143] : memref<1x512xf32, #tpu.memory_space<vmem>>, vector<1x256xf32>
    %143 = vector.broadcast %141 : f32 to vector<1x256xf32>
    %144 = arith.mulf %142, %143 : vector<1x256xf32>
    %145 = arith.addf %140, %144 : vector<1x256xf32>
    %c37 = arith.constant 37 : index
    %146 = memref.load %arg7[%c37] : memref<49xf32, #tpu.memory_space<smem>>
    %c0_45 = arith.constant 0 : index
    %c159 = arith.constant 159 : index
    %147 = vector.load %arg10[%c0_45, %c159] : memref<1x512xf32, #tpu.memory_space<vmem>>, vector<1x256xf32>
    %148 = vector.broadcast %146 : f32 to vector<1x256xf32>
    %149 = arith.mulf %147, %148 : vector<1x256xf32>
    %150 = arith.addf %145, %149 : vector<1x256xf32>
    %c44 = arith.constant 44 : index
    %151 = memref.load %arg7[%c44] : memref<49xf32, #tpu.memory_space<smem>>
    %c0_46 = arith.constant 0 : index
    %c175 = arith.constant 175 : index
    %152 = vector.load %arg10[%c0_46, %c175] : memref<1x512xf32, #tpu.memory_space<vmem>>, vector<1x256xf32>
    %153 = vector.broadcast %151 : f32 to vector<1x256xf32>
    %154 = arith.mulf %152, %153 : vector<1x256xf32>
    %155 = arith.addf %150, %154 : vector<1x256xf32>
    %c1_i32_47 = arith.constant 1 : i32
    %156 = vector.broadcast %c1_i32_47 : i32 to vector<1x256xi32>
    %157 = arith.cmpi sge, %36, %156 : vector<1x256xi32>
    %cst_48 = arith.constant 0.000000e+00 : f32
    %158 = vector.broadcast %cst_48 : f32 to vector<1x256xf32>
    %159 = arith.select %157, %155, %158 : vector<1x256xi1>, vector<1x256xf32>
    %160 = arith.addf %119, %159 : vector<1x256xf32>
    %cst_49 = arith.constant 0.000000e+00 : f32
    %161 = vector.broadcast %cst_49 : f32 to vector<1x256xf32>
    %c3 = arith.constant 3 : index
    %162 = memref.load %arg7[%c3] : memref<49xf32, #tpu.memory_space<smem>>
    %c0_50 = arith.constant 0 : index
    %c80 = arith.constant 80 : index
    %163 = vector.load %arg10[%c0_50, %c80] : memref<1x512xf32, #tpu.memory_space<vmem>>, vector<1x256xf32>
    %164 = vector.broadcast %162 : f32 to vector<1x256xf32>
    %165 = arith.mulf %163, %164 : vector<1x256xf32>
    %166 = arith.addf %161, %165 : vector<1x256xf32>
    %c10 = arith.constant 10 : index
    %167 = memref.load %arg7[%c10] : memref<49xf32, #tpu.memory_space<smem>>
    %c0_51 = arith.constant 0 : index
    %c96 = arith.constant 96 : index
    %168 = vector.load %arg10[%c0_51, %c96] : memref<1x512xf32, #tpu.memory_space<vmem>>, vector<1x256xf32>
    %169 = vector.broadcast %167 : f32 to vector<1x256xf32>
    %170 = arith.mulf %168, %169 : vector<1x256xf32>
    %171 = arith.addf %166, %170 : vector<1x256xf32>
    %c17 = arith.constant 17 : index
    %172 = memref.load %arg7[%c17] : memref<49xf32, #tpu.memory_space<smem>>
    %c0_52 = arith.constant 0 : index
    %c112 = arith.constant 112 : index
    %173 = vector.load %arg10[%c0_52, %c112] : memref<1x512xf32, #tpu.memory_space<vmem>>, vector<1x256xf32>
    %174 = vector.broadcast %172 : f32 to vector<1x256xf32>
    %175 = arith.mulf %173, %174 : vector<1x256xf32>
    %176 = arith.addf %171, %175 : vector<1x256xf32>
    %c24 = arith.constant 24 : index
    %177 = memref.load %arg7[%c24] : memref<49xf32, #tpu.memory_space<smem>>
    %c0_53 = arith.constant 0 : index
    %c128_54 = arith.constant 128 : index
    %178 = vector.load %arg10[%c0_53, %c128_54] : memref<1x512xf32, #tpu.memory_space<vmem>>, vector<1x256xf32>
    %179 = vector.broadcast %177 : f32 to vector<1x256xf32>
    %180 = arith.mulf %178, %179 : vector<1x256xf32>
    %181 = arith.addf %176, %180 : vector<1x256xf32>
    %c31 = arith.constant 31 : index
    %182 = memref.load %arg7[%c31] : memref<49xf32, #tpu.memory_space<smem>>
    %c0_55 = arith.constant 0 : index
    %c144 = arith.constant 144 : index
    %183 = vector.load %arg10[%c0_55, %c144] : memref<1x512xf32, #tpu.memory_space<vmem>>, vector<1x256xf32>
    %184 = vector.broadcast %182 : f32 to vector<1x256xf32>
    %185 = arith.mulf %183, %184 : vector<1x256xf32>
    %186 = arith.addf %181, %185 : vector<1x256xf32>
    %c38 = arith.constant 38 : index
    %187 = memref.load %arg7[%c38] : memref<49xf32, #tpu.memory_space<smem>>
    %c0_56 = arith.constant 0 : index
    %c160 = arith.constant 160 : index
    %188 = vector.load %arg10[%c0_56, %c160] : memref<1x512xf32, #tpu.memory_space<vmem>>, vector<1x256xf32>
    %189 = vector.broadcast %187 : f32 to vector<1x256xf32>
    %190 = arith.mulf %188, %189 : vector<1x256xf32>
    %191 = arith.addf %186, %190 : vector<1x256xf32>
    %c45 = arith.constant 45 : index
    %192 = memref.load %arg7[%c45] : memref<49xf32, #tpu.memory_space<smem>>
    %c0_57 = arith.constant 0 : index
    %c176 = arith.constant 176 : index
    %193 = vector.load %arg10[%c0_57, %c176] : memref<1x512xf32, #tpu.memory_space<vmem>>, vector<1x256xf32>
    %194 = vector.broadcast %192 : f32 to vector<1x256xf32>
    %195 = arith.mulf %193, %194 : vector<1x256xf32>
    %196 = arith.addf %191, %195 : vector<1x256xf32>
    %197 = arith.addf %160, %196 : vector<1x256xf32>
    %cst_58 = arith.constant 0.000000e+00 : f32
    %198 = vector.broadcast %cst_58 : f32 to vector<1x256xf32>
    %c4 = arith.constant 4 : index
    %199 = memref.load %arg7[%c4] : memref<49xf32, #tpu.memory_space<smem>>
    %c0_59 = arith.constant 0 : index
    %c81 = arith.constant 81 : index
    %200 = vector.load %arg10[%c0_59, %c81] : memref<1x512xf32, #tpu.memory_space<vmem>>, vector<1x256xf32>
    %201 = vector.broadcast %199 : f32 to vector<1x256xf32>
    %202 = arith.mulf %200, %201 : vector<1x256xf32>
    %203 = arith.addf %198, %202 : vector<1x256xf32>
    %c11 = arith.constant 11 : index
    %204 = memref.load %arg7[%c11] : memref<49xf32, #tpu.memory_space<smem>>
    %c0_60 = arith.constant 0 : index
    %c97 = arith.constant 97 : index
    %205 = vector.load %arg10[%c0_60, %c97] : memref<1x512xf32, #tpu.memory_space<vmem>>, vector<1x256xf32>
    %206 = vector.broadcast %204 : f32 to vector<1x256xf32>
    %207 = arith.mulf %205, %206 : vector<1x256xf32>
    %208 = arith.addf %203, %207 : vector<1x256xf32>
    %c18 = arith.constant 18 : index
    %209 = memref.load %arg7[%c18] : memref<49xf32, #tpu.memory_space<smem>>
    %c0_61 = arith.constant 0 : index
    %c113 = arith.constant 113 : index
    %210 = vector.load %arg10[%c0_61, %c113] : memref<1x512xf32, #tpu.memory_space<vmem>>, vector<1x256xf32>
    %211 = vector.broadcast %209 : f32 to vector<1x256xf32>
    %212 = arith.mulf %210, %211 : vector<1x256xf32>
    %213 = arith.addf %208, %212 : vector<1x256xf32>
    %c25 = arith.constant 25 : index
    %214 = memref.load %arg7[%c25] : memref<49xf32, #tpu.memory_space<smem>>
    %c0_62 = arith.constant 0 : index
    %c129 = arith.constant 129 : index
    %215 = vector.load %arg10[%c0_62, %c129] : memref<1x512xf32, #tpu.memory_space<vmem>>, vector<1x256xf32>
    %216 = vector.broadcast %214 : f32 to vector<1x256xf32>
    %217 = arith.mulf %215, %216 : vector<1x256xf32>
    %218 = arith.addf %213, %217 : vector<1x256xf32>
    %c32 = arith.constant 32 : index
    %219 = memref.load %arg7[%c32] : memref<49xf32, #tpu.memory_space<smem>>
    %c0_63 = arith.constant 0 : index
    %c145 = arith.constant 145 : index
    %220 = vector.load %arg10[%c0_63, %c145] : memref<1x512xf32, #tpu.memory_space<vmem>>, vector<1x256xf32>
    %221 = vector.broadcast %219 : f32 to vector<1x256xf32>
    %222 = arith.mulf %220, %221 : vector<1x256xf32>
    %223 = arith.addf %218, %222 : vector<1x256xf32>
    %c39 = arith.constant 39 : index
    %224 = memref.load %arg7[%c39] : memref<49xf32, #tpu.memory_space<smem>>
    %c0_64 = arith.constant 0 : index
    %c161 = arith.constant 161 : index
    %225 = vector.load %arg10[%c0_64, %c161] : memref<1x512xf32, #tpu.memory_space<vmem>>, vector<1x256xf32>
    %226 = vector.broadcast %224 : f32 to vector<1x256xf32>
    %227 = arith.mulf %225, %226 : vector<1x256xf32>
    %228 = arith.addf %223, %227 : vector<1x256xf32>
    %c46 = arith.constant 46 : index
    %229 = memref.load %arg7[%c46] : memref<49xf32, #tpu.memory_space<smem>>
    %c0_65 = arith.constant 0 : index
    %c177 = arith.constant 177 : index
    %230 = vector.load %arg10[%c0_65, %c177] : memref<1x512xf32, #tpu.memory_space<vmem>>, vector<1x256xf32>
    %231 = vector.broadcast %229 : f32 to vector<1x256xf32>
    %232 = arith.mulf %230, %231 : vector<1x256xf32>
    %233 = arith.addf %228, %232 : vector<1x256xf32>
    %c15_i32 = arith.constant 15 : i32
    %234 = vector.broadcast %c15_i32 : i32 to vector<1x256xi32>
    %235 = arith.cmpi slt, %36, %234 : vector<1x256xi32>
    %cst_66 = arith.constant 0.000000e+00 : f32
    %236 = vector.broadcast %cst_66 : f32 to vector<1x256xf32>
    %237 = arith.select %235, %233, %236 : vector<1x256xi1>, vector<1x256xf32>
    %238 = arith.addf %197, %237 : vector<1x256xf32>
    %cst_67 = arith.constant 0.000000e+00 : f32
    %239 = vector.broadcast %cst_67 : f32 to vector<1x256xf32>
    %c5 = arith.constant 5 : index
    %240 = memref.load %arg7[%c5] : memref<49xf32, #tpu.memory_space<smem>>
    %c0_68 = arith.constant 0 : index
    %c82 = arith.constant 82 : index
    %241 = vector.load %arg10[%c0_68, %c82] : memref<1x512xf32, #tpu.memory_space<vmem>>, vector<1x256xf32>
    %242 = vector.broadcast %240 : f32 to vector<1x256xf32>
    %243 = arith.mulf %241, %242 : vector<1x256xf32>
    %244 = arith.addf %239, %243 : vector<1x256xf32>
    %c12 = arith.constant 12 : index
    %245 = memref.load %arg7[%c12] : memref<49xf32, #tpu.memory_space<smem>>
    %c0_69 = arith.constant 0 : index
    %c98 = arith.constant 98 : index
    %246 = vector.load %arg10[%c0_69, %c98] : memref<1x512xf32, #tpu.memory_space<vmem>>, vector<1x256xf32>
    %247 = vector.broadcast %245 : f32 to vector<1x256xf32>
    %248 = arith.mulf %246, %247 : vector<1x256xf32>
    %249 = arith.addf %244, %248 : vector<1x256xf32>
    %c19 = arith.constant 19 : index
    %250 = memref.load %arg7[%c19] : memref<49xf32, #tpu.memory_space<smem>>
    %c0_70 = arith.constant 0 : index
    %c114 = arith.constant 114 : index
    %251 = vector.load %arg10[%c0_70, %c114] : memref<1x512xf32, #tpu.memory_space<vmem>>, vector<1x256xf32>
    %252 = vector.broadcast %250 : f32 to vector<1x256xf32>
    %253 = arith.mulf %251, %252 : vector<1x256xf32>
    %254 = arith.addf %249, %253 : vector<1x256xf32>
    %c26 = arith.constant 26 : index
    %255 = memref.load %arg7[%c26] : memref<49xf32, #tpu.memory_space<smem>>
    %c0_71 = arith.constant 0 : index
    %c130 = arith.constant 130 : index
    %256 = vector.load %arg10[%c0_71, %c130] : memref<1x512xf32, #tpu.memory_space<vmem>>, vector<1x256xf32>
    %257 = vector.broadcast %255 : f32 to vector<1x256xf32>
    %258 = arith.mulf %256, %257 : vector<1x256xf32>
    %259 = arith.addf %254, %258 : vector<1x256xf32>
    %c33 = arith.constant 33 : index
    %260 = memref.load %arg7[%c33] : memref<49xf32, #tpu.memory_space<smem>>
    %c0_72 = arith.constant 0 : index
    %c146 = arith.constant 146 : index
    %261 = vector.load %arg10[%c0_72, %c146] : memref<1x512xf32, #tpu.memory_space<vmem>>, vector<1x256xf32>
    %262 = vector.broadcast %260 : f32 to vector<1x256xf32>
    %263 = arith.mulf %261, %262 : vector<1x256xf32>
    %264 = arith.addf %259, %263 : vector<1x256xf32>
    %c40 = arith.constant 40 : index
    %265 = memref.load %arg7[%c40] : memref<49xf32, #tpu.memory_space<smem>>
    %c0_73 = arith.constant 0 : index
    %c162 = arith.constant 162 : index
    %266 = vector.load %arg10[%c0_73, %c162] : memref<1x512xf32, #tpu.memory_space<vmem>>, vector<1x256xf32>
    %267 = vector.broadcast %265 : f32 to vector<1x256xf32>
    %268 = arith.mulf %266, %267 : vector<1x256xf32>
    %269 = arith.addf %264, %268 : vector<1x256xf32>
    %c47 = arith.constant 47 : index
    %270 = memref.load %arg7[%c47] : memref<49xf32, #tpu.memory_space<smem>>
    %c0_74 = arith.constant 0 : index
    %c178 = arith.constant 178 : index
    %271 = vector.load %arg10[%c0_74, %c178] : memref<1x512xf32, #tpu.memory_space<vmem>>, vector<1x256xf32>
    %272 = vector.broadcast %270 : f32 to vector<1x256xf32>
    %273 = arith.mulf %271, %272 : vector<1x256xf32>
    %274 = arith.addf %269, %273 : vector<1x256xf32>
    %c14_i32 = arith.constant 14 : i32
    %275 = vector.broadcast %c14_i32 : i32 to vector<1x256xi32>
    %276 = arith.cmpi slt, %36, %275 : vector<1x256xi32>
    %cst_75 = arith.constant 0.000000e+00 : f32
    %277 = vector.broadcast %cst_75 : f32 to vector<1x256xf32>
    %278 = arith.select %276, %274, %277 : vector<1x256xi1>, vector<1x256xf32>
    %279 = arith.addf %238, %278 : vector<1x256xf32>
    %cst_76 = arith.constant 0.000000e+00 : f32
    %280 = vector.broadcast %cst_76 : f32 to vector<1x256xf32>
    %c6 = arith.constant 6 : index
    %281 = memref.load %arg7[%c6] : memref<49xf32, #tpu.memory_space<smem>>
    %c0_77 = arith.constant 0 : index
    %c83 = arith.constant 83 : index
    %282 = vector.load %arg10[%c0_77, %c83] : memref<1x512xf32, #tpu.memory_space<vmem>>, vector<1x256xf32>
    %283 = vector.broadcast %281 : f32 to vector<1x256xf32>
    %284 = arith.mulf %282, %283 : vector<1x256xf32>
    %285 = arith.addf %280, %284 : vector<1x256xf32>
    %c13 = arith.constant 13 : index
    %286 = memref.load %arg7[%c13] : memref<49xf32, #tpu.memory_space<smem>>
    %c0_78 = arith.constant 0 : index
    %c99 = arith.constant 99 : index
    %287 = vector.load %arg10[%c0_78, %c99] : memref<1x512xf32, #tpu.memory_space<vmem>>, vector<1x256xf32>
    %288 = vector.broadcast %286 : f32 to vector<1x256xf32>
    %289 = arith.mulf %287, %288 : vector<1x256xf32>
    %290 = arith.addf %285, %289 : vector<1x256xf32>
    %c20 = arith.constant 20 : index
    %291 = memref.load %arg7[%c20] : memref<49xf32, #tpu.memory_space<smem>>
    %c0_79 = arith.constant 0 : index
    %c115 = arith.constant 115 : index
    %292 = vector.load %arg10[%c0_79, %c115] : memref<1x512xf32, #tpu.memory_space<vmem>>, vector<1x256xf32>
    %293 = vector.broadcast %291 : f32 to vector<1x256xf32>
    %294 = arith.mulf %292, %293 : vector<1x256xf32>
    %295 = arith.addf %290, %294 : vector<1x256xf32>
    %c27 = arith.constant 27 : index
    %296 = memref.load %arg7[%c27] : memref<49xf32, #tpu.memory_space<smem>>
    %c0_80 = arith.constant 0 : index
    %c131 = arith.constant 131 : index
    %297 = vector.load %arg10[%c0_80, %c131] : memref<1x512xf32, #tpu.memory_space<vmem>>, vector<1x256xf32>
    %298 = vector.broadcast %296 : f32 to vector<1x256xf32>
    %299 = arith.mulf %297, %298 : vector<1x256xf32>
    %300 = arith.addf %295, %299 : vector<1x256xf32>
    %c34 = arith.constant 34 : index
    %301 = memref.load %arg7[%c34] : memref<49xf32, #tpu.memory_space<smem>>
    %c0_81 = arith.constant 0 : index
    %c147 = arith.constant 147 : index
    %302 = vector.load %arg10[%c0_81, %c147] : memref<1x512xf32, #tpu.memory_space<vmem>>, vector<1x256xf32>
    %303 = vector.broadcast %301 : f32 to vector<1x256xf32>
    %304 = arith.mulf %302, %303 : vector<1x256xf32>
    %305 = arith.addf %300, %304 : vector<1x256xf32>
    %c41 = arith.constant 41 : index
    %306 = memref.load %arg7[%c41] : memref<49xf32, #tpu.memory_space<smem>>
    %c0_82 = arith.constant 0 : index
    %c163 = arith.constant 163 : index
    %307 = vector.load %arg10[%c0_82, %c163] : memref<1x512xf32, #tpu.memory_space<vmem>>, vector<1x256xf32>
    %308 = vector.broadcast %306 : f32 to vector<1x256xf32>
    %309 = arith.mulf %307, %308 : vector<1x256xf32>
    %310 = arith.addf %305, %309 : vector<1x256xf32>
    %c48 = arith.constant 48 : index
    %311 = memref.load %arg7[%c48] : memref<49xf32, #tpu.memory_space<smem>>
    %c0_83 = arith.constant 0 : index
    %c179 = arith.constant 179 : index
    %312 = vector.load %arg10[%c0_83, %c179] : memref<1x512xf32, #tpu.memory_space<vmem>>, vector<1x256xf32>
    %313 = vector.broadcast %311 : f32 to vector<1x256xf32>
    %314 = arith.mulf %312, %313 : vector<1x256xf32>
    %315 = arith.addf %310, %314 : vector<1x256xf32>
    %c13_i32 = arith.constant 13 : i32
    %316 = vector.broadcast %c13_i32 : i32 to vector<1x256xi32>
    %317 = arith.cmpi slt, %36, %316 : vector<1x256xi32>
    %cst_84 = arith.constant 0.000000e+00 : f32
    %318 = vector.broadcast %cst_84 : f32 to vector<1x256xf32>
    %319 = arith.select %317, %315, %318 : vector<1x256xi1>, vector<1x256xf32>
    %320 = arith.addf %279, %319 : vector<1x256xf32>
    %321 = arith.negf %320 : vector<1x256xf32>
    %322 = math.exp %321 : vector<1x256xf32>
    %cst_85 = arith.constant 1.000000e+00 : f32
    %323 = vector.broadcast %cst_85 : f32 to vector<1x256xf32>
    %324 = arith.addf %323, %322 : vector<1x256xf32>
    %325 = arith.divf %323, %324 : vector<1x256xf32>
    %cst_86 = arith.constant 1.000000e+00 : f32
    %326 = vector.broadcast %cst_86 : f32 to vector<1x256xf32>
    %327 = arith.addf %326, %325 : vector<1x256xf32>
    %328 = vector.broadcast %327 : vector<1x256xf32> to vector<32x256xf32>
    %329 = arith.mulf %9, %328 : vector<32x256xf32>
    %cst_87 = arith.constant dense<0xFF800000> : vector<32xf32>
    %330 = vector.multi_reduction <maximumf>, %329, %cst_87 [1] : vector<32x256xf32> to vector<32xf32>
    %331 = vector.shape_cast %330 : vector<32xf32> to vector<32x1xf32>
    %c0_88 = arith.constant 0 : index
    %c0_89 = arith.constant 0 : index
    %332 = vector.load %arg5[%c0_88, %c0_89] : memref<32x2xf32, #tpu.memory_space<vmem>>, vector<32x2xf32>
    %333 = vector.broadcast %331 : vector<32x1xf32> to vector<32x2xf32>
    %334 = arith.mulf %332, %333 : vector<32x2xf32>
    %cst_90 = arith.constant dense<0.000000e+00> : vector<2xf32>
    %335 = vector.multi_reduction <add>, %334, %cst_90 [0] : vector<32x2xf32> to vector<2xf32>
    %336 = vector.shape_cast %335 : vector<2xf32> to vector<1x2xf32>
    %cst_91 = arith.constant 0.000000e+00 : f32
    %337 = vector.broadcast %cst_91 : f32 to vector<1x2xf32>
    %338 = arith.maximumf %336, %337 : vector<1x2xf32>
    %c0_92 = arith.constant 0 : index
    %c0_93 = arith.constant 0 : index
    %339 = vector.load %arg6[%c0_92, %c0_93] : memref<32x2xf32, #tpu.memory_space<vmem>>, vector<32x2xf32>
    %340 = vector.broadcast %338 : vector<1x2xf32> to vector<32x2xf32>
    %341 = arith.mulf %339, %340 : vector<32x2xf32>
    %cst_94 = arith.constant dense<0.000000e+00> : vector<32xf32>
    %342 = vector.multi_reduction <add>, %341, %cst_94 [1] : vector<32x2xf32> to vector<32xf32>
    %343 = vector.shape_cast %342 : vector<32xf32> to vector<32x1xf32>
    %344 = arith.negf %343 : vector<32x1xf32>
    %345 = math.exp %344 : vector<32x1xf32>
    %cst_95 = arith.constant 1.000000e+00 : f32
    %346 = vector.broadcast %cst_95 : f32 to vector<32x1xf32>
    %347 = arith.addf %346, %345 : vector<32x1xf32>
    %348 = arith.divf %346, %347 : vector<32x1xf32>
    %349 = vector.broadcast %348 : vector<32x1xf32> to vector<32x256xf32>
    %350 = arith.mulf %9, %349 : vector<32x256xf32>
    %351 = arith.truncf %350 : vector<32x256xf32> to vector<32x256xbf16>
    %c0_96 = arith.constant 0 : index
    %c0_97 = arith.constant 0 : index
    %c0_98 = arith.constant 0 : index
    %352 = vector.load %arg8[%c0_96, %c0_97, %c0_98] : memref<1x32x256xbf16, #tpu.memory_space<vmem>>, vector<1x32x256xbf16>
    %353 = vector.shape_cast %352 : vector<1x32x256xbf16> to vector<32x256xbf16>
    %354 = vector.shape_cast %351 : vector<32x256xbf16> to vector<1x32x256xbf16>
    tpu.vector_store %arg8[%c0_96, %c0_97, %c0_98], %354 {strides = array<i32>} : memref<1x32x256xbf16, #tpu.memory_space<vmem>>, vector<1x32x256xbf16>,
    %c0_99 = arith.constant 0 : index
    %c0_100 = arith.constant 0 : index
    %c0_101 = arith.constant 0 : index
    %355 = vector.load %arg9[%c0_99, %c0_100, %c0_101] : memref<1x1x256xf32, #tpu.memory_space<vmem>>, vector<1x1x256xf32>
    %356 = vector.shape_cast %355 : vector<1x1x256xf32> to vector<1x256xf32>
    %357 = vector.shape_cast %325 : vector<1x256xf32> to vector<1x1x256xf32>
    tpu.vector_store %arg9[%c0_99, %c0_100, %c0_101], %357 {strides = array<i32>} : memref<1x1x256xf32, #tpu.memory_space<vmem>>, vector<1x1x256xf32>,
    return
  }
  func.func @transform_0(%arg0: i32) -> (i32, i32, i32) {
    %c0_i32 = arith.constant 0 : i32
    %c0_i32_0 = arith.constant 0 : i32
    %c0_i32_1 = arith.constant 0 : i32
    return %arg0, %c0_i32, %c0_i32_0 : i32, i32, i32
  }
  func.func @transform_1(%arg0: i32) -> (i32, i32, i32) {
    %c0_i32 = arith.constant 0 : i32
    %c0_i32_0 = arith.constant 0 : i32
    %c0_i32_1 = arith.constant 0 : i32
    return %arg0, %c0_i32, %c0_i32_0 : i32, i32, i32
  }
  func.func @transform_2(%arg0: i32) -> (i32, i32) {
    %c0_i32 = arith.constant 0 : i32
    %c0_i32_0 = arith.constant 0 : i32
    %c0_i32_1 = arith.constant 0 : i32
    return %c0_i32, %c0_i32_0 : i32, i32
  }
  func.func @transform_3(%arg0: i32) -> (i32, i32) {
    %c0_i32 = arith.constant 0 : i32
    %c0_i32_0 = arith.constant 0 : i32
    %c0_i32_1 = arith.constant 0 : i32
    return %c0_i32, %c0_i32_0 : i32, i32
  }
  func.func @transform_4(%arg0: i32) -> (i32, i32) {
    %c0_i32 = arith.constant 0 : i32
    %c0_i32_0 = arith.constant 0 : i32
    %c0_i32_1 = arith.constant 0 : i32
    return %c0_i32, %c0_i32_0 : i32, i32
  }
  func.func @transform_5(%arg0: i32) -> (i32, i32) {
    %c0_i32 = arith.constant 0 : i32
    %c0_i32_0 = arith.constant 0 : i32
    %c0_i32_1 = arith.constant 0 : i32
    return %c0_i32, %c0_i32_0 : i32, i32
  }
  func.func @transform_6(%arg0: i32) -> i32 {
    %c0_i32 = arith.constant 0 : i32
    %c0_i32_0 = arith.constant 0 : i32
    return %c0_i32 : i32
  }
  func.func @transform_7(%arg0: i32) -> (i32, i32, i32) {
    %c0_i32 = arith.constant 0 : i32
    %c0_i32_0 = arith.constant 0 : i32
    %c0_i32_1 = arith.constant 0 : i32
    return %arg0, %c0_i32, %c0_i32_0 : i32, i32, i32
  }
  func.func @transform_8(%arg0: i32) -> (i32, i32, i32) {
    %c0_i32 = arith.constant 0 : i32
    %c0_i32_0 = arith.constant 0 : i32
    %c0_i32_1 = arith.constant 0 : i32
    return %arg0, %c0_i32, %c0_i32_0 : i32, i32, i32
  }
}

</mosaic_0001>

<bundles_post_ra>
// kernel: tpu_custom_call.1
= control target key start
LH: loop header
LB: loop body
LE: loop exit
PB: predicated region body
PF: predicated region fallthrough
CT: control target
= control target key end

     0   :  { %s2631_s0 = inlined_call_operand.hbm [shape: f32[2,64,256], index: 0, kind: input, shape index: {}]   ;;  %s2632_s1 = inlined_call_operand.vmem [shape: f32[2,1,256], index: 1, kind: input, shape index: {}]   ;;  %s2633_s2 = inlined_call_operand.vmem [shape: bf16[32,64], index: 2, kind: input, shape index: {}]   ;;  %s2634_s3 = inlined_call_operand.vmem [shape: f32[32,1], index: 3, kind: input, shape index: {}]   ;;  %s2635_s4 = inlined_call_operand.vmem [shape: f32[32,2], index: 4, kind: input, shape index: {}]   ;;  %s2636_s5 = inlined_call_operand.vmem [shape: f32[32,2], index: 5, kind: input, shape index: {}]   ;;  %s2637_s6 = inlined_call_operand.vmem [shape: f32[49], index: 6, kind: input, shape index: {}]   ;;  %s2638_s7 = inlined_call_operand.hbm [shape: bf16[2,32,256], index: 7, kind: output, shape index: {0}]   ;;  %s2639_s8 = inlined_call_operand.hbm [shape: f32[2,1,256], index: 8, kind: output, shape index: {1}]  }
   0x1   :  { %2643 = sst [smem:[#allocation16_spill]] %s2637_s6 }
   0x2   :  { %14 = vsyncpa [#allocation4], 0 }
   0x3   :  { %16 = vsyncpa [#allocation4 + $0x1], 0 }
   0x4   :  { %17 = vsyncpa [#allocation6], 0 }
   0x5   :  { %18 = vsyncpa [#allocation5], 0 }
   0x6   :  { %20 = vsyncpa [#allocation5 + $0x1], 0 }
   0x7   :  { %21 = vsyncpa [#allocation10], 0 }
   0x8   :  { %23 = vsyncpa [#allocation10 + $0x1], 0  ;;  %s2000_s27 = smov 0   ;;  %s2002_s28 = smov 0  }
   0x9   :  { %s2004_s29 = smov 0   ;;  %s2006_s30 = smov 0  }
   0xa LB: > { %s2021_s9 = sadd.s32 4294967295, %s1930_s30   ;;  %s1576_s10 = sadd.s32 4294967294, %s1930_s30   ;;  %s1930_s30 = sphi %s2006_s30, %s2665_s30   ;;  %s1926_s29 = sphi %s2004_s29, %s2664_s29   ;;  %s1922_s28 = sphi %s2002_s28, %s2663_s28   ;;  %s1918_s27 = sphi %s2000_s27, %s2662_s27  }
   0xb   : > { %s2025_s11 = sadd.s32 1, %s1930_s30   ;;  %s36_s12 = sadd.s32 1, %s1926_s29 }
   0xc   : > { %s33_s13 = ssub.s32 %s1930_s30, %s2025_s11  ;;  %p43_p0 = scmp.ne.s32.totalorder %s1926_s29, %s1922_s28 }
   0xd   : > { %p34_p1 = scmp.eq.s32.totalorder %s33_s13, 0  ;;  %p44_p2 = scmp.eq.s32.totalorder %s1930_s30, 0 }
   0xe   : > { %p49_p3 = scmp.ne.s32.totalorder %s1922_s28, %s1918_s27  ;;  %p2641_p4 = scmp.eq.s32.totalorder %s2021_s9, 0 }
   0xf   : > { %s2037_s14 = scalar_select %p34_p1, %s1926_s29, %s36_s12  }
  0x10   : > { %p2039_p5 = por %p44_p2, %p43_p0  ;;  %p2045_p6 = por %p2641_p4, %p49_p3 }
  0x11   : > { %2644 = sst [smem:[#allocation15_spill]] %s2037_s14  ;;  %p204_p7 = scmp.eq.s32.totalorder %s2021_s9, 1 }
  0x12   : > { %s2646_s16 = scalar_select %p2045_p6, 1, 0 }
  0x13   : > { %p210_p8 = scmp.eq.s32.totalorder %s1576_s10, 1  ;;  %p1577_p9 = scmp.ge.s32.totalorder %s1930_s30, 1 }
  0x14   : > { %p243_p10 = scmp.lt.s32.totalorder %s1930_s30, 3  ;;  %p2052_p11 = por %p204_p7, %p43_p0 }
  0x15   : > { %p2056_p12 = por %p210_p8, %p49_p3  ;;  %s2650_s6 = sld [smem:[#allocation16_spill]] }
  0x16   : > { %s2647_s17 = scalar_select %p2052_p11, 1, 0 }
  0x17   : > { %s2648_s18 = scalar_select %p2056_p12, 1, 0 }
  0x18   : > { %p2060_p13 = pnand %p1577_p9, %p243_p10  ;;  %p1700_p2 = scmp.lt.s32.totalorder %s1930_s30, 2 }
  0x19   : > { %s279_s24 = sand.u32 1, %s1926_s29  }
  0x1a   : > { %p1684_p1 = pneg %p2060_p13  ;;  %p2080_p3 = pnand %p1700_p2, %p2039_p5 }
  0x1b   : > { %s268_s22 = sshll.u32 %s2650_s6, 4  ;;  %s1580_s26 = sshll.u32 %s279_s24, 7  ;;  %s269_s22 = int_to_ptr.vmem [resolvable:$true] %s268_s22 }
  0x1c   : > { %p2073_p7 = pnand %p1684_p1, %p2641_p4  ;;  %s1783_s10 = scalar_lea.vmem %s269_s22, 16 }
  0x1d   : > { %p1784_p8 = scmp.ne.s32.totalorder %s269_s22, %s1783_s10  ;;  %p1791_p12 = scmp.lt.s32.totalorder %s269_s22, %s269_s22 }
  0x1e   : > { %p1785_p9 = pneg %p2073_p7  ;;  %p1792_p11 = scmp.lt.s32.totalorder %s1783_s10, %s1783_s10 }
  0x20   : > { %p1786_p10 = pnand %p1785_p9, %p1784_p8  ;;  %p1793_p1 = por %p1792_p11, %p1791_p12 }
  0x22   : > { %p1787_p0 = pneg %p1786_p10 }
  0x24   : > { %p1794_p4 = pnand %p1793_p1, %p1787_p0 }
  0x26   : > { %1797 = shalt.err (!%p1794_p4)
}
  0x27   : > { %s1932_s12 = smov [#allocation7]   ;;  %s1659_s13 = sshll.u32 %s1930_s30, 11 }
  0x28   : > { %1687 = dma.vmem_to_smem (!%p2073_p7), %s269_s22, 16, %s1932_s12, [#allocation6]  }
  0x29   : > { %s283_s15 = scalar_lea.vmem [#allocation3], %s1580_s26  ;;  %s2092_s14 = scalar_lea.hbm %s2631_s0, %s1659_s13 }
  0x2a   : > { %s290_s20 = sshll.u32 %s283_s15, 4  ;;  %s2096_s10 = scalar_lea.sflag [#allocation4], %s279_s24  ;;  %s2094_s20 = int_to_ptr.vmem [resolvable:$true] %s290_s20 }
  0x2b   : > { %s1798_s23 = scalar_lea.hbm %s2092_s14, 2048  ;;  %p1800_p5 = pneg %p2080_p3 }
  0x2c   : > { %p1799_p4 = scmp.ne.s32.totalorder %s2092_s14, %s1798_s23  ;;  %s1803_s26 = scalar_lea.hbm %s2631_s0, 4096 }
  0x2d   : > { %p1804_p0 = scmp.lt.u32.totalorder %s2092_s14, %s2631_s0  ;;  %p1805_p2 = scmp.lt.u32.totalorder %s1803_s26, %s1798_s23 }
  0x2e   : > { %p1801_p11 = pnand %p1800_p5, %p1799_p4  ;;  %p1807_p8 = scmp.lt.u32.totalorder %s1798_s23, %s2092_s14 }
  0x2f   : > { %p1806_p7 = por %p1805_p2, %p1804_p0 }
  0x30   : > { %p1802_p12 = pneg %p1801_p11 }
  0x31   : > { %p1808_p9 = por %p1807_p8, %p1806_p7 }
  0x33   : > { %p1809_p10 = pnand %p1808_p9, %p1802_p12 }
  0x35   : > { %1812 = shalt.err (!%p1809_p10)
}
  0x36   : > { %s1813_s24 = scalar_lea.vmem %s2094_s20, 2048  ;;  %s1933_s15 = smov [#allocation3]  }
  0x37   : > { %p1814_p1 = scmp.ne.s32.totalorder %s2094_s20, %s1813_s24  ;;  %s1818_s21 = sshll.u32 %s1933_s15, 4  ;;  %s1819_s21 = int_to_ptr.vmem [resolvable:$false] %s1818_s21 }
  0x38   : > { %s1820_s22 = scalar_lea.vmem %s1819_s21, 4096  ;;  %p1821_p6 = scmp.lt.s32.totalorder %s2094_s20, %s1819_s21 }
  0x39   : > { %p1816_p4 = pnand %p1814_p1, %p1800_p5  ;;  %p1822_p0 = scmp.lt.s32.totalorder %s1820_s22, %s1813_s24 }
  0x3b   : > { %p1817_p11 = pneg %p1816_p4  ;;  %p1823_p2 = por %p1822_p0, %p1821_p6 }
  0x3d   : > { %p1824_p7 = pnand %p1823_p2, %p1817_p11 }
  0x3f   : > { %1827 = shalt.err (!%p1824_p7)
}
  0x40   : > { %s1934_s23 = smov 256   ;;  %s1935_s6 = smov 16  }
  0x41   : > { %1691 = dma.hbm_to_vmem [thread:$0]  (!%p2080_p3), %s2092_s14, 2048, %s2094_s20, %s2096_s10, %s1934_s23, %s1934_s23, %s1935_s6  }
  0x42   : > { %309 = sbr.rel (%p2060_p13) target bundleno = 1078 (0x436), region = 48  ;;  %s2127_s26 = sand.u32 (!%p2060_p13), 1, %s1922_s28  }
  0x43   : > { %s1584_s12 = sshll.u32 (!%p2060_p13), %s2127_s26, 7  ;;  %s312_s13 = scalar_lea.sflag (!%p2060_p13), [#allocation4], %s2127_s26 }
  0x44   : > { %s2131_s24 = scalar_lea.vmem (!%p2060_p13), [#allocation3], %s1584_s12  ;;  %p2653_p6 = scmp.ne.s32.totalorder (!%p2060_p13), %s2646_s16, 0 }
  0x49   : > { %1901 = dma.done.wait (%p2653_p6), %s312_s13, 2048  }
  0x4a   : > { %1903 = vsyncadd (%p2653_p6), %s312_s13, 4294965248  ;;  %p2654_p3 = scmp.eq.s32.totalorder %s2021_s9, 0 }
  0x4c   : > { %1905 = dma.done.wait (%p2654_p3), [#allocation6], 16   ;;  %p2655_p13 = pmov %p2654_p3 }
  0x4e   : > { %1907 = vsyncadd (%p2655_p13), [#allocation6], 4294967280 }
  0x4f   : > { %324 = sfence }
  0x50   : > { %v368_v0 = vld [vmem:[%s2131_s24 + $0x8] sm:$0xff]  ;;  %v370_v1 = vld [vmem:[%s2131_s24 + $0x18] sm:$0xff]  ;;  %v367_v2 = vld [vmem:[%s2131_s24] sm:$0xff]  ;;  %v1936_v7 = vmov 0   ;;  %vm429_vm0 = vcmask 523264   ;;  %v499_v31 = vlaneseq  ;;  %v1937_v32 = vmov 0.0  }
  0x51   : > { %v384_v3 = vpack.c.bf16 %v370_v1, %v368_v0  ;;  %v369_v4 = vld [vmem:[%s2131_s24 + $0x10] sm:$0xff]  ;;  %v372_v5 = vld [vmem:[%s2131_s24 + $0x28] sm:$0xff]  ;;  %v374_v6 = vld [vmem:[%s2131_s24 + $0x38] sm:$0xff]  ;;  %468 = vmatprep.mubr.bf16.mxu0 %v1936_v7  ;;  %478 = vmatprep.mubr.bf16.mxu1 %v1936_v7  ;;  %p362_p5 = scmp.lt.s32.totalorder %s2021_s9, 1  ;;  %s1600_s25 = sld [smem:[#allocation7 + $0x8]]  ;;  %vm601_vm3 = vcmask 916480  }
  0x52   : > { %v383_v8 = vpack.c.bf16 %v369_v4, %v367_v2  ;;  %v386_v9 = vpack.c.bf16 %v374_v6, %v372_v5  ;;  %v371_v10 = vld [vmem:[%s2131_s24 + $0x20] sm:$0xff]  ;;  %v373_v11 = vld [vmem:[%s2131_s24 + $0x30] sm:$0xff]  ;;  %v376_v12 = vld [vmem:[%s2131_s24 + $0x48] sm:$0xff]  ;;  %1756 = vset.pattern.permute.xlu1 %v1936_v7  ;;  %1755 = vset.pattern.permute.xlu0 %v1936_v7  ;;  %vm537_vm1 = vcmp.lt.s32.totalorder %v499_v31, 128  ;;  %v2181_v35 = vshrl.u32 %v499_v31, 7  ;;  %s1593_s20 = sld [smem:[#allocation7 + $0x7]] }
  0x53   : > { %436 = vmatprep.subr.bf16.mxu0 %v384_v3  ;;  %1666 = vmatprep.subr.bf16.mxu1 %v384_v3  ;;  %v378_v13 = vld [vmem:[%s2131_s24 + $0x58] sm:$0xff]  ;;  %v385_v14 = vpack.c.bf16 %v373_v11, %v371_v10  ;;  %v375_v15 = vld [vmem:[%s2131_s24 + $0x40] sm:$0xff]  ;;  %v377_v16 = vld [vmem:[%s2131_s24 + $0x50] sm:$0xff]  ;;  %539 = vst.msk [vmem:[#allocation2] sm:$0x1] %vm537_vm1, %v1937_v32  ;;  %s363_s13 = scalar_select %p362_p5, %s2021_s9, 1 }
  0x54   : > { %437 = vmatpush1.bf16.msra.mxu0 %v383_v8  ;;  %1670 = vmatpush1.bf16.msra.mxu1 %v383_v8  ;;  %v388_v17 = vpack.c.bf16 %v378_v13, %v376_v12  ;;  %v380_v18 = vld [vmem:[%s2131_s24 + $0x68] sm:$0xff]  ;;  %v382_v19 = vld [vmem:[%s2131_s24 + $0x78] sm:$0xff]  ;;  %v387_v22 = vpack.c.bf16 %v377_v16, %v375_v15  ;;  %v379_v24 = vld [vmem:[%s2131_s24 + $0x60] sm:$0xff]  ;;  %540 = vst.msk [vmem:[#allocation2 + $0x3] sm:$0x1] %vm537_vm1, %v1937_v32  ;;  %v2187_v36 = vsub.s32 0, %v2181_v35 }
  0x55   : > { %438 = vmatprep.subr.bf16.mxu0 %v386_v9  ;;  %1667 = vmatprep.subr.bf16.mxu1 %v386_v9  ;;  %v397_v20 = vld [vmem:[%s2634_s3 + $0x10] sm:$0xff]  ;;  %v395_v21 = vld [vmem:[%s2634_s3] sm:$0xff]  ;;  %v390_v23 = vpack.c.bf16 %v382_v19, %v380_v18  ;;  %v398_v26 = vld [vmem:[%s2634_s3 + $0x18] sm:$0xff]  ;;  %v2190_v38 = vsub.s32 1, %v2181_v35  ;;  %vm2223_vm2 = vcmp.lt.s32.totalorder %v499_v31, 256  ;;  %s1601_s10 = sld [smem:[#allocation7 + $0xf]] }
  0x56   : > { %v381_v25 = vld [vmem:[%s2131_s24 + $0x70] sm:$0xff]  ;;  %411 = vperm.xlu1 %1756, %v397_v20   ;;  %401 = vperm.xlu0 %1755, %v395_v21   ;;  %v396_v27 = vld [vmem:[%s2634_s3 + $0x8] sm:$0xff]  ;;  %v1757_v29 = vld [vmem:[%s2633_s2] sm:$0xff]   ;;  %s1588_s24 = sshll.u32 %s363_s13, 1  ;;  %v1938_v21 = vmov 1966171168  }
  0x57   : > { %v389_v28 = vpack.c.bf16 %v381_v25, %v379_v24  ;;  %v1758_v30 = vld [vmem:[%s2633_s2 + $0x8] sm:$0xff]   ;;  %s365_s19 = scalar_lea.vmem %s2632_s1, %s1588_s24  ;;  %s1594_s15 = sld [smem:[#allocation7 + $0xe]]  ;;  %vm612_vm4 = vcmask 785408   ;;  %vm623_vm5 = vcmask 654336   ;;  %vm645_vm6 = vcmask 392192  }
  0x58   : > { %439 = vmatpush1.bf16.msra.mxu0 %v385_v14  ;;  %1671 = vmatpush1.bf16.msra.mxu1 %v385_v14  ;;  %v497_v37 = vld [vmem:[%s365_s19] sm:$0x3]  ;;  %s1595_s21 = sld [smem:[#allocation7 + $0x15]]  ;;  %s1607_s22 = sld [smem:[#allocation7 + $0x9]]  ;;  %vm656_vm7 = vcmask 261120   ;;  %vm775_vm8 = vcmask 408576  }
  0x59   : > { %440 = vmatprep.subr.bf16.mxu0 %v388_v17  ;;  %1668 = vmatprep.subr.bf16.mxu1 %v388_v17  ;;  %v502_v44 = vrot.slane %v497_v37, %v2187_v36  ;;  %v506_v49 = vrot.slane %v497_v37, %v2190_v38  ;;  %s1608_s23 = sld [smem:[#allocation7 + $0x10]]  ;;  %s1602_s6 = sld [smem:[#allocation7 + $0x16]]  ;;  %vm681_vm9 = vcmask 416768   ;;  %vm869_vm10 = vcmask 400384  }
  0x5a   : > { %416 = vperm.xlu1 %1756, %v398_v26   ;;  %406 = vperm.xlu0 %1755, %v396_v27   ;;  %s1939_s12 = smov 112   ;;  %s1596_s13 = sld [smem:[#allocation7 + $0x1c]]  ;;  %vm1053_vm1 = vcmask 384000  }
  0x5b   : > { %s1614_s24 = sld [smem:[#allocation7 + $0xa]]  ;;  %s1940_s14 = smov 96  }
  0x5c   : > { %441 = vmatpush1.bf16.msra.mxu0 %v387_v22  ;;  %1672 = vmatpush1.bf16.msra.mxu1 %v387_v22  ;;  %v545_v22 = vunpack.c.l.s4 %v1938_v21  ;;  %s1609_s16 = sld [smem:[#allocation7 + $0x17]]  ;;  %s1603_s19 = sld [smem:[#allocation7 + $0x1d]] }
  0x5d   : > { %442 = vmatprep.subr.bf16.mxu0 %v390_v23  ;;  %1669 = vmatprep.subr.bf16.mxu1 %v390_v23  ;;  %p2658_p8 = scmp.ne.s32.totalorder %s2647_s17, 0 }
  0x5e   : > { %v546_v27 = vunpack.c.0.s8 %v545_v22 }
  0x60   : > { %443 = vmatpush1.bf16.msra.mxu0 %v389_v28  ;;  %1673 = vmatpush1.bf16.msra.mxu1 %v389_v28 }
  0x63   : > { %1591 = vmatmul.mubr.msk.bf16.vlgmr.msra.gmra.mrb[0].mxu0 %vm429_vm0, %v1757_v29  ;;  %1592 = vmatmul.mubr.msk.bf16.vlgmr.msra.gmra.mrb[0].mxu1 %vm429_vm0, %v1758_v30 }
  0xd5   : > { %v412_v33 = vpop.permute.xlu1 %411  ;;  %v402_v34 = vpop.permute.xlu0 %401 }
  0xd9   : > { %v417_v39 = vpop.permute.xlu1 %416  ;;  %v407_v40 = vpop.permute.xlu0 %406 }
 0x136   : > { %v470_v41 = vpop.f32.mrb[0].mxu0  ;;  %v480_v42 = vpop.f32.mrb[0].mxu1 }
 0x137   : > { %v471_v43 = vadd.f32 %v470_v41, %v402_v34  ;;  %v481_v45 = vadd.f32 %v480_v42, %v412_v33  ;;  %v472_v46 = vpop.f32.mrb[1].mxu0  ;;  %v482_v47 = vpop.f32.mrb[1].mxu1  ;;  %v695_v41 = vstv %s1600_s25  ;;  %v595_v42 = vstv %s1593_s20  ;;  %s1941_s25 = smov 80   ;;  %s1615_s20 = sld [smem:[#allocation7 + $0x11]] }
 0x138   : > { %v473_v48 = vadd.f32 %v472_v46, %v402_v34  ;;  %v483_v50 = vadd.f32 %v482_v47, %v412_v33  ;;  %v474_v51 = vpop.f32.mrb[2].mxu0  ;;  %v484_v52 = vpop.f32.mrb[2].mxu1  ;;  %v2219_v33 = vsub.s32 %v546_v27, %v2181_v35  ;;  %v705_v46 = vstv %s1601_s10  ;;  %s1621_s10 = sld [smem:[#allocation7 + $0xb]] }
 0x139   : > { %v2194_v53 = vmax.f32 %v471_v43, 0.0  ;;  %v2196_v54 = vmax.f32 %v481_v45, 0.0  ;;  %v475_v55 = vadd.f32 %v474_v51, %v407_v40  ;;  %v485_v56 = vadd.f32 %v484_v52, %v417_v39  ;;  %v476_v57 = vpop.f32.mrb[3].mxu0  ;;  %v486_v58 = vpop.f32.mrb[3].mxu1 }
 0x13a   : > { %v2198_v59 = vmax.f32 %v473_v48, 0.0  ;;  %v2200_v60 = vmax.f32 %v483_v50, 0.0  ;;  %v477_v61 = vadd.f32 %v476_v57, %v407_v40  ;;  %v487_v62 = vadd.f32 %v486_v58, %v417_v39 }
 0x13b   : > { %v509_v63 = vmul.f32 %v502_v44, %v2194_v53  ;;  %v513_v0 = vmul.f32 %v502_v44, %v2196_v54  ;;  %v2204_v1 = vmax.f32 %v475_v55, 0.0  ;;  %v2206_v2 = vmax.f32 %v485_v56, 0.0 }
 0x13c   : > { %v510_v3 = vmul.f32 %v506_v49, %v2198_v59  ;;  %v514_v4 = vmul.f32 %v506_v49, %v2200_v60  ;;  %v2210_v5 = vmax.f32 %v477_v61, 0.0  ;;  %v2212_v6 = vmax.f32 %v487_v62, 0.0 }
 0x13d   : > { %v511_v7 = vmul.f32 %v502_v44, %v2204_v1  ;;  %v515_v8 = vmul.f32 %v502_v44, %v2206_v2  ;;  %v517_v11 = vmax.f32 %v509_v63, %v513_v0  ;;  %v606_v47 = vstv %s1594_s15  ;;  %s1604_s15 = sld [smem:[#allocation7 + $0x24]] }
 0x13e   : > { %v512_v9 = vmul.f32 %v506_v49, %v2210_v5  ;;  %v516_v10 = vmul.f32 %v506_v49, %v2212_v6  ;;  %v526_v13 = vmax.f32 %v510_v3, %v514_v4  ;;  %v617_v50 = vstv %s1595_s21  ;;  %s1597_s21 = sld [smem:[#allocation7 + $0x23]] }
 0x13f   : > { %v518_v12 = vmax.f32 %v511_v7, %v515_v8  ;;  %v789_v51 = vstv %s1607_s22  ;;  %v799_v56 = vstv %s1608_s23  ;;  %v715_v57 = vstv %s1602_s6  ;;  %s1942_s22 = smov 64   ;;  %s1622_s23 = sld [smem:[#allocation7 + $0x12]] }
 0x140   : > { %v527_v14 = vmax.f32 %v512_v9, %v516_v10  ;;  %v629_v63 = vstv %s1596_s13  ;;  %v883_v0 = vstv %s1614_s24  ;;  %v809_v7 = vstv %s1609_s16  ;;  %s1610_s6 = sld [smem:[#allocation7 + $0x1e]]  ;;  %s1616_s13 = sld [smem:[#allocation7 + $0x18]] }
 0x141   : > { %v519_v15 = vmax.f32 %v517_v11, %v518_v12  ;;  %v725_v8 = vstv %s1603_s19  ;;  %v893_v11 = vstv %s1615_s20  ;;  %v973_v12 = vstv %s1621_s10  ;;  %s1628_s24 = sld [smem:[#allocation7 + $0xc]]  ;;  %s1605_s16 = sld [smem:[#allocation7 + $0x2b]] }
 0x142   : > { %v528_v16 = vmax.f32 %v526_v13, %v527_v14  ;;  %s1598_s19 = sld [smem:[#allocation7 + $0x2a]]  ;;  %s1943_s20 = smov 48  }
 0x143   : > { %v520_v17 = vrot.slane %v519_v15, 4  ;;  %s1623_s10 = sld [smem:[#allocation7 + $0x19]] }
 0x144   : > { %v529_v18 = vrot.slane %v528_v16, 4 }
 0x145   : > { %v521_v19 = vmax.f32 %v519_v15, %v520_v17  ;;  %v735_v15 = vstv %s1604_s15  ;;  %s1611_s15 = sld [smem:[#allocation7 + $0x25]] }
 0x146   : > { %v530_v20 = vmax.f32 %v528_v16, %v529_v18  ;;  %v639_v16 = vstv %s1597_s21  ;;  %s1635_s21 = sld [smem:[#allocation7 + $0xd]] }
 0x147   : > { %v522_v23 = vrot.slane %v521_v19, 2 }
 0x148   : > { %v531_v24 = vrot.slane %v530_v20, 2 }
 0x149   : > { %v523_v25 = vmax.f32 %v521_v19, %v522_v23  ;;  %v983_v19 = vstv %s1622_s23  ;;  %s1629_s23 = sld [smem:[#allocation7 + $0x13]] }
 0x14a   : > { %v532_v26 = vmax.f32 %v530_v20, %v531_v24  ;;  %v819_v20 = vstv %s1610_s6  ;;  %v904_v24 = vstv %s1616_s13  ;;  %s1612_s6 = sld [smem:[#allocation7 + $0x2c]]  ;;  %s1617_s13 = sld [smem:[#allocation7 + $0x1f]] }
 0x14b   : > { %v524_v28 = vrot.slane %v523_v25, 1 }
 0x14c   : > { %v533_v29 = vrot.slane %v532_v26, 1 }
 0x14d   : > { %v525_v30 = vmax.f32 %v523_v25, %v524_v28  ;;  %v1067_v25 = vstv %s1628_s24  ;;  %v745_v28 = vstv %s1605_s16  ;;  %s1944_s24 = smov 32   ;;  %s1630_s16 = sld [smem:[#allocation7 + $0x1a]] }
 0x14e   : > { %v534_v32 = vmax.f32 %v532_v26, %v533_v29  ;;  %v650_v29 = vstv %s1598_s19  ;;  %s1624_s19 = sld [smem:[#allocation7 + $0x20]] }
 0x150   : > { %v543_v34 = vcombine.low %v525_v30, %v534_v32 }
 0x152   : > { %v550_v37 = vrot.slane %v543_v34, %v2219_v33  ;;  %v993_v34 = vstv %s1623_s10  ;;  %s1618_s10 = sld [smem:[#allocation7 + $0x26]] }
 0x154   : > { %v557_v40 = vrot.slane %v550_v37, %v2219_v33  ;;  %v829_v37 = vstv %s1611_s15  ;;  %s1636_s15 = sld [smem:[#allocation7 + $0x14]] }
 0x156   : > { %561 = vst.msk [vmem:[#allocation2 + $0x1] sm:$0x3] %vm2223_vm2, %v557_v40 }
 0x15d   : > { %v2230_v43 = vld [vmem:[#allocation2] sm:$0x7] }
 0x15e   : > { %v696_v44 = vmul.f32 %v695_v41, %v2230_v43  ;;  %v596_v45 = vmul.f32 %v595_v42, %v2230_v43  ;;  %v706_v48 = vmul.f32 %v705_v46, %v2230_v43  ;;  %v607_v49 = vmul.f32 %v606_v47, %v2230_v43  ;;  %v2246_v62 = vld [vmem:[#allocation2 + $0x1] sm:$0x7] }
 0x15f   : > { %v618_v52 = vmul.f32 %v617_v50, %v2230_v43  ;;  %v790_v55 = vmul.f32 %v789_v51, %v2230_v43  ;;  %v800_v58 = vmul.f32 %v799_v56, %v2230_v43  ;;  %v716_v61 = vmul.f32 %v715_v57, %v2230_v43  ;;  %v903_v23 = vld [vmem:[#allocation2 + $0x1] sm:$0x3] }
 0x160   : > { %698 = vrot.lane.b32.xlu1 %v696_v44, %s1939_s12  ;;  %598 = vrot.lane.b32.xlu0 %v596_v45, %s1939_s12  ;;  %v630_v3 = vmul.f32 %v629_v63, %v2246_v62  ;;  %v884_v4 = vmul.f32 %v883_v0, %v2230_v43  ;;  %v810_v9 = vmul.f32 %v809_v7, %v2230_v43  ;;  %v1161_v42 = vstv %s1635_s21  ;;  %s1631_s21 = sld [smem:[#allocation7 + $0x21]] }
 0x161   : > { %v726_v10 = vmul.f32 %v725_v8, %v2246_v62  ;;  %v894_v13 = vmul.f32 %v893_v11, %v2230_v43  ;;  %v974_v14 = vmul.f32 %v973_v12, %v2230_v43  ;;  %v736_v17 = vmul.f32 %v735_v15, %v2246_v62 }
 0x162   : > { %v640_v18 = vmul.f32 %v639_v16, %v2246_v62  ;;  %v984_v21 = vmul.f32 %v983_v19, %v2230_v43  ;;  %v820_v22 = vmul.f32 %v819_v20, %v2246_v62  ;;  %v905_v26 = vmul.f32 %v904_v24, %v903_v23 }
 0x163   : > { %v1068_v27 = vmul.f32 %v1067_v25, %v2230_v43  ;;  %v746_v30 = vmul.f32 %v745_v28, %v2246_v62  ;;  %v651_v32 = vmul.f32 %v650_v29, %v2246_v62  ;;  %v994_v40 = vmul.f32 %v993_v34, %v2246_v62 }
 0x164   : > { %708 = vrot.lane.b32.xlu1 %v706_v48, %s1940_s14  ;;  %609 = vrot.lane.b32.xlu0 %v607_v49, %s1940_s14  ;;  %v830_v41 = vmul.f32 %v829_v37, %v2246_v62  ;;  %v1077_v44 = vstv %s1629_s23  ;;  %v1162_v45 = vmul.f32 %v1161_v42, %v2230_v43  ;;  %v839_v47 = vstv %s1612_s6  ;;  %s1625_s23 = sld [smem:[#allocation7 + $0x27]]  ;;  %s1637_s6 = sld [smem:[#allocation7 + $0x1b]] }
 0x165   : > { %v1078_v46 = vmul.f32 %v1077_v44, %v2230_v43  ;;  %v914_v48 = vstv %s1617_s13  ;;  %v840_v49 = vmul.f32 %v839_v47, %v2246_v62  ;;  %v1087_v51 = vstv %s1630_s16  ;;  %s1632_s13 = sld [smem:[#allocation7 + $0x28]]  ;;  %s1626_s16 = sld [smem:[#allocation7 + $0x2e]] }
 0x166   : > { %v915_v50 = vmul.f32 %v914_v48, %v2246_v62  ;;  %v924_v57 = vstv %s1618_s10  ;;  %v1097_v0 = vstv %s1631_s21  ;;  %s1638_s10 = sld [smem:[#allocation7 + $0x22]]  ;;  %s1945_s21 = smov 51  }
 0x168   : > { %620 = vrot.lane.b32.xlu1 %v618_v52, %s1941_s25  ;;  %792 = vrot.lane.b32.xlu0 %v790_v55, %s1939_s12  ;;  %v1003_v52 = vstv %s1624_s19  ;;  %v1088_v55 = vmul.f32 %v1087_v51, %v2246_v62  ;;  %s1633_s19 = sld [smem:[#allocation7 + $0x2f]] }
 0x169   : > { %v1004_v56 = vmul.f32 %v1003_v52, %v2246_v62 }
 0x16b   : > { %v1107_v12 = vstv %s1632_s13  ;;  %s2385_s13 = sld [smem:[#allocation7 + $0x5]] }
 0x16c   : > { %802 = vrot.lane.b32.xlu1 %v800_v58, %s1940_s14  ;;  %718 = vrot.lane.b32.xlu0 %v716_v61, %s1941_s25  ;;  %v1171_v58 = vstv %s1636_s15  ;;  %v925_v61 = vmul.f32 %v924_v57, %v2246_v62  ;;  %s1640_s15 = sld [smem:[#allocation7 + $0x30]] }
 0x16d   : > { %v1172_v63 = vmul.f32 %v1171_v58, %v2230_v43 }
 0x16e   : > { %v1117_v16 = vstv %s1633_s19  ;;  %s1947_s19 = smov 49  }
 0x170   : > { %632 = vrot.lane.b32.xlu1 %v630_v3, %s1942_s22  ;;  %886 = vrot.lane.b32.xlu0 %v884_v4, %s1939_s12  ;;  %v1013_v3 = vstv %s1625_s23  ;;  %v1098_v4 = vmul.f32 %v1097_v0, %v2246_v62  ;;  %s2373_s23 = sld [smem:[#allocation7 + $0x3]] }
 0x171   : > { %v1014_v7 = vmul.f32 %v1013_v3, %v2246_v62 }
 0x172   : > { %v1211_v20 = vstv %s1640_s15  ;;  %s1950_s15 = smov 45  }
 0x174   : > { %812 = vrot.lane.b32.xlu1 %v810_v9, %s1941_s25  ;;  %728 = vrot.lane.b32.xlu0 %v726_v10, %s1942_s22  ;;  %v1181_v9 = vstv %s1637_s6  ;;  %s2379_s6 = sld [smem:[#allocation7 + $0x4]] }
 0x175   : > { %v1182_v11 = vmul.f32 %v1181_v9, %v2246_v62 }
 0x178   : > { %896 = vrot.lane.b32.xlu1 %v894_v13, %s1940_s14  ;;  %976 = vrot.lane.b32.xlu0 %v974_v14, %s1939_s12  ;;  %v1023_v13 = vstv %s1626_s16  ;;  %v1108_v14 = vmul.f32 %v1107_v12, %v2246_v62  ;;  %s2397_s16 = sld [smem:[#allocation7 + $0x6]] }
 0x179   : > { %v1024_v15 = vmul.f32 %v1023_v13, %v2246_v62 }
 0x17c   : > { %738 = vrot.lane.b32.xlu1 %v736_v17, %s1943_s20  ;;  %642 = vrot.lane.b32.xlu0 %v640_v18, %s1943_s20  ;;  %v1191_v17 = vstv %s1638_s10  ;;  %v1118_v18 = vmul.f32 %v1117_v16, %v2246_v62  ;;  %s1948_s10 = smov 47  }
 0x17d   : > { %v1192_v19 = vmul.f32 %v1191_v17, %v2246_v62 }
 0x180   : > { %986 = vrot.lane.b32.xlu1 %v984_v21, %s1940_s14  ;;  %822 = vrot.lane.b32.xlu0 %v820_v22, %s1942_s22  ;;  %v1212_v22 = vmul.f32 %v1211_v20, %v2246_v62 }
 0x184   : > { %907 = vrot.lane.b32.xlu1 %v905_v26, %s1941_s25  ;;  %1070 = vrot.lane.b32.xlu0 %v1068_v27, %s1939_s12 }
 0x188   : > { %748 = vrot.lane.b32.xlu1 %v746_v30, %s1944_s24  ;;  %653 = vrot.lane.b32.xlu0 %v651_v32, %s1944_s24 }
 0x18c   : > { %996 = vrot.lane.b32.xlu1 %v994_v40, %s1941_s25  ;;  %832 = vrot.lane.b32.xlu0 %v830_v41, %s1943_s20 }
 0x190   : > { %1164 = vrot.lane.b32.xlu1 %v1162_v45, %s1939_s12  ;;  %1080 = vrot.lane.b32.xlu0 %v1078_v46, %s1940_s14  ;;  %s1619_s12 = sld [smem:[#allocation7 + $0x2d]] }
 0x194   : > { %842 = vrot.lane.b32.xlu1 %v840_v49, %s1944_s24  ;;  %917 = vrot.lane.b32.xlu0 %v915_v50, %s1942_s22 }
 0x196   : > { %v934_v8 = vstv %s1619_s12  ;;  %s1946_s12 = smov 50  }
 0x197   : > { %v935_v10 = vmul.f32 %v934_v8, %v2246_v62 }
 0x198   : > { %1090 = vrot.lane.b32.xlu1 %v1088_v55, %s1941_s25  ;;  %1006 = vrot.lane.b32.xlu0 %v1004_v56, %s1942_s22 }
 0x19c   : > { %927 = vrot.lane.b32.xlu1 %v925_v61, %s1943_s20  ;;  %1174 = vrot.lane.b32.xlu0 %v1172_v63, %s1940_s14  ;;  %s1639_s14 = sld [smem:[#allocation7 + $0x29]] }
 0x1a0   : > { %1100 = vrot.lane.b32.xlu1 %v1098_v4, %s1942_s22  ;;  %1016 = vrot.lane.b32.xlu0 %v1014_v7, %s1943_s20 }
 0x1a2   : > { %v1201_v21 = vstv %s1639_s14  ;;  %s1587_s14 = sshll.u32 %s2127_s26, 1 }
 0x1a3   : > { %v1202_v23 = vmul.f32 %v1201_v21, %v2246_v62 }
 0x1a4   : > { %937 = vrot.lane.b32.xlu1 %v935_v10, %s1944_s24  ;;  %1184 = vrot.lane.b32.xlu0 %v1182_v11, %s1941_s25  ;;  %s589_s25 = sld [smem:[#allocation7]] }
 0x1a8   : > { %1110 = vrot.lane.b32.xlu1 %v1108_v14, %s1943_s20  ;;  %1026 = vrot.lane.b32.xlu0 %v1024_v15, %s1944_s24 }
 0x1aa   : > { %v591_v48 = vstv %s589_s25  ;;  %s2510_s25 = scalar_lea.vmem [#allocation9], %s1587_s14 }
 0x1ab   : > { %v592_v56 = vmul.f32 %v591_v48, %v2230_v43 }
 0x1ac   : > { %1120 = vrot.lane.b32.xlu1 %v1118_v18, %s1944_s24  ;;  %1194 = vrot.lane.b32.xlu0 %v1192_v19, %s1942_s22  ;;  %s1599_s22 = sld [smem:[#allocation7 + $0x1]] }
 0x1b0   : > { %1214 = vrot.lane.b32.xlu1 %v1212_v22, %s1944_s24  ;;  %1204 = vrot.lane.b32.xlu0 %v1202_v23, %s1943_s20  ;;  %s2331_s24 = sld [smem:[#allocation7 + $0x2]] }
 0x1b2   : > { %v691_v50 = vstv %s1599_s22 }
 0x1b3   : > { %v692_v4 = vmul.f32 %v691_v50, %v2230_v43 }
 0x1d2   : > { %v699_v24 = vpop.permute.xlu1 %698  ;;  %v599_v25 = vpop.permute.xlu0 %598 }
 0x1d3   : > { %v600_v44 = vrot.slane %v599_v25, 1  ;;  %v700_v47 = vrot.slane %v699_v24, 1 }
 0x1d5   : > { %v602_v51 = vsel %vm601_vm3, %v599_v25, %v600_v44  ;;  %v701_v61 = vsel %vm601_vm3, %v699_v24, %v700_v47  ;;  %v785_v24 = vstv %s2331_s24 }
 0x1d6   : > { %v709_v26 = vpop.permute.xlu1 %708  ;;  %v610_v27 = vpop.permute.xlu0 %609  ;;  %v604_v7 = vadd.f32 %v602_v51, %v592_v56  ;;  %v703_v12 = vadd.f32 %v701_v61, %v692_v4 }
 0x1d7   : > { %v611_v49 = vrot.slane %v610_v27, 1  ;;  %v710_v52 = vrot.slane %v709_v26, 1 }
 0x1d9   : > { %v613_v63 = vsel %vm612_vm4, %v610_v27, %v611_v49  ;;  %v711_v8 = vsel %vm612_vm4, %v709_v26, %v710_v52  ;;  %v786_v52 = vmul.f32 %v785_v24, %v2230_v43 }
 0x1da   : > { %v621_v28 = vpop.permute.xlu1 %620  ;;  %v2317_v29 = vpop.permute.xlu0 %792  ;;  %v615_v13 = vadd.f32 %v613_v63, %v604_v7  ;;  %v713_v19 = vadd.f32 %v711_v8, %v703_v12 }
 0x1db   : > { %v622_v55 = vrot.slane %v621_v28, 1  ;;  %v794_v21 = vrot.slane %v2317_v29, 1 }
 0x1dd   : > { %v624_v9 = vsel %vm623_vm5, %v621_v28, %v622_v55  ;;  %v795_v50 = vsel %vm601_vm3, %v2317_v29, %v794_v21 }
 0x1de   : > { %v2319_v30 = vpop.permute.xlu1 %802  ;;  %v719_v32 = vpop.permute.xlu0 %718  ;;  %v626_v20 = vadd.f32 %v624_v9, %v615_v13  ;;  %v797_v29 = vadd.f32 %v795_v50, %v786_v52 }
 0x1df   : > { %v720_v0 = vrot.slane %v719_v32, 1  ;;  %v804_v44 = vrot.slane %v2319_v30, 1 }
 0x1e1   : > { %v721_v16 = vsel %vm623_vm5, %v719_v32, %v720_v0  ;;  %v805_v63 = vsel %vm612_vm4, %v2319_v30, %v804_v44  ;;  %v879_v44 = vstv %s2373_s23  ;;  %s1665_s23 = sshll.u32 %s2021_s9, 5 }
 0x1e2   : > { %v633_v34 = vpop.permute.xlu1 %632  ;;  %v2321_v37 = vpop.permute.xlu0 %886  ;;  %v723_v25 = vadd.f32 %v721_v16, %v713_v19 }
 0x1e3   : > { %v634_v3 = vrot.slane %v633_v34, 7  ;;  %v888_v24 = vrot.slane %v2321_v37, 1 }
 0x1e5   : > { %v635_v17 = vsel %vm429_vm0, %v634_v3, %v633_v34  ;;  %v2363_v3 = vsub.s32 2, %v2181_v35 }
 0x1e6   : > { %v2323_v40 = vpop.permute.xlu1 %812  ;;  %v729_v62 = vpop.permute.xlu0 %728  ;;  %v637_v26 = vadd.f32 %v635_v17, %v626_v20 }
 0x1e7   : > { %v730_v10 = vrot.slane %v729_v62, 7 }
 0x1e9   : > { %v731_v22 = vsel %vm429_vm0, %v730_v10, %v729_v62  ;;  %v814_v62 = vrot.slane %v2323_v40, 1 }
 0x1ea   : > { %v2325_v41 = vpop.permute.xlu1 %896  ;;  %v2327_v42 = vpop.permute.xlu0 %976  ;;  %v733_v48 = vadd.f32 %v731_v22, %v723_v25 }
 0x1eb   : > { %v815_v9 = vsel %vm623_vm5, %v2323_v40, %v814_v62  ;;  %v880_v62 = vmul.f32 %v879_v44, %v2230_v43 }
 0x1ee   : > { %v739_v45 = vpop.permute.xlu1 %738  ;;  %v643_v46 = vpop.permute.xlu0 %642 }
 0x1ef   : > { %v644_v11 = vrot.slane %v643_v46, 7  ;;  %v740_v18 = vrot.slane %v739_v45, 7 }
 0x1f1   : > { %v646_v23 = vsel %vm645_vm6, %v644_v11, %v643_v46  ;;  %v741_v32 = vsel %vm645_vm6, %v740_v18, %v739_v45  ;;  %v807_v11 = vadd.f32 %v805_v63, %v797_v29 }
 0x1f2   : > { %v2333_v57 = vpop.permute.xlu1 %986  ;;  %v823_v58 = vpop.permute.xlu0 %822  ;;  %v648_v49 = vadd.f32 %v646_v23, %v637_v26  ;;  %v743_v55 = vadd.f32 %v741_v32, %v733_v48  ;;  %v898_v32 = vrot.slane %v2325_v41, 1  ;;  %v889_v48 = vsel %vm601_vm3, %v2321_v37, %v888_v24 }
 0x1f3   : > { %v824_v0 = vrot.slane %v823_v58, 7  ;;  %v817_v30 = vadd.f32 %v815_v9, %v807_v11  ;;  %v988_v37 = vrot.slane %v2333_v57, 1  ;;  %v1063_v9 = vstv %s2385_s13 }
 0x1f4   : > { %v899_v52 = vsel %vm612_vm4, %v2325_v41, %v898_v32 }
 0x1f5   : > { %v825_v35 = vsel %vm429_vm0, %v824_v0, %v823_v58 }
 0x1f6   : > { %v2340_v14 = vpop.permute.xlu1 %907  ;;  %v2342_v15 = vpop.permute.xlu0 %1070  ;;  %v827_v18 = vadd.f32 %v825_v35, %v817_v30  ;;  %v989_v35 = vsel %vm612_vm4, %v2333_v57, %v988_v37 }
 0x1f7   : > { %v909_v50 = vrot.slane %v2340_v14, 7  ;;  %v1072_v30 = vrot.slane %v2342_v15, 1 }
 0x1f9   : > { %v910_v29 = vsel %vm623_vm5, %v909_v50, %v2340_v14 }
 0x1fa   : > { %v749_v27 = vpop.permute.xlu1 %748  ;;  %v654_v28 = vpop.permute.xlu0 %653 }
 0x1fb   : > { %v750_v34 = vrot.slane %v749_v27, 7  ;;  %v655_v47 = vrot.slane %v654_v28, 7 }
 0x1fd   : > { %v751_v46 = vsel %vm656_vm7, %v750_v34, %v749_v27  ;;  %v657_v51 = vsel %vm656_vm7, %v655_v47, %v654_v28 }
 0x1fe   : > { %v659_v56 = vadd.f32 %v657_v51, %v648_v49  ;;  %v2358_v61 = vpop.permute.xlu1 %996  ;;  %v833_v45 = vpop.permute.xlu0 %832  ;;  %v753_v4 = vadd.f32 %v751_v46, %v743_v55  ;;  %v978_v49 = vrot.slane %v2327_v42, 1  ;;  %v969_v55 = vstv %s2379_s6 }
 0x1ff   : > { %v834_v10 = vrot.slane %v833_v45, 7  ;;  %v970_v41 = vmul.f32 %v969_v55, %v2230_v43 }
 0x200   : > { %v670_v7 = vrot.slane %v659_v56, %v2190_v38  ;;  %v666_v8 = vrot.slane %v659_v56, %v2187_v36  ;;  %v760_v16 = vrot.slane %v753_v4, %v2187_v36  ;;  %v674_v17 = vrot.slane %v659_v56, %v2363_v3 }
 0x201   : > { %v835_v40 = vsel %vm645_vm6, %v834_v10, %v833_v45  ;;  %v768_v58 = vrot.slane %v753_v4, %v2363_v3  ;;  %v764_v23 = vrot.slane %v753_v4, %v2190_v38  ;;  %v891_v45 = vadd.f32 %v889_v48, %v880_v62 }
 0x202   : > { %v2369_v12 = vpop.permute.xlu1 %1164  ;;  %v2371_v13 = vpop.permute.xlu0 %1080  ;;  %677 = vrot.lane.b32.xlu1 %v670_v7, %s1945_s21  ;;  %675 = vrot.lane.b32.xlu0 %v666_v8, %s1945_s21  ;;  %v837_v22 = vadd.f32 %v835_v40, %v827_v18  ;;  %v979_v0 = vsel %vm601_vm3, %v2327_v42, %v978_v49  ;;  %v998_v4 = vrot.slane %v2358_v61, 7 }
 0x203   : > { %v901_v8 = vadd.f32 %v899_v52, %v891_v45  ;;  %v981_v14 = vadd.f32 %v979_v0, %v970_v41  ;;  %v1082_v40 = vrot.slane %v2371_v13, 1  ;;  %v1166_v57 = vrot.slane %v2369_v12, 1 }
 0x204   : > { %v999_v18 = vsel %vm623_vm5, %v998_v4, %v2358_v61 }
 0x205   : > { %v1083_v48 = vsel %vm612_vm4, %v2371_v13, %v1082_v40  ;;  %v1167_v55 = vsel %vm601_vm3, %v2369_v12, %v1166_v57 }
 0x206   : > { %v843_v19 = vpop.permute.xlu1 %842  ;;  %v918_v20 = vpop.permute.xlu0 %917  ;;  %769 = vrot.lane.b32.xlu1 %v760_v16, %s1946_s12  ;;  %679 = vrot.lane.b32.xlu0 %v674_v17, %s1945_s21  ;;  %v912_v17 = vadd.f32 %v910_v29, %v901_v8 }
 0x207   : > { %v844_v21 = vrot.slane %v843_v19, 7  ;;  %v919_v56 = vrot.slane %v918_v20, 7 }
 0x209   : > { %v845_v25 = vsel %vm656_vm7, %v844_v21, %v843_v19  ;;  %v920_v42 = vsel %vm429_vm0, %v919_v56, %v918_v20  ;;  %v1157_v19 = vstv %s2397_s16  ;;  %s2552_s16 = scalar_lea.hbm %s2639_s8, %s1665_s23 }
 0x20a   : > { %v847_v26 = vadd.f32 %v845_v25, %v837_v22  ;;  %v2387_v27 = vpop.permute.xlu1 %1090  ;;  %v1007_v28 = vpop.permute.xlu0 %1006  ;;  %773 = vrot.lane.b32.xlu1 %v768_v58, %s1946_s12  ;;  %771 = vrot.lane.b32.xlu0 %v764_v23, %s1946_s12  ;;  %v991_v58 = vadd.f32 %v989_v35, %v981_v14  ;;  %v1064_v23 = vmul.f32 %v1063_v9, %v2230_v43  ;;  %s1450_s12 = sshll.u32 %s2510_s25, 4  ;;  %s1451_s12 = int_to_ptr.vmem [resolvable:$true] %s1450_s12 }
 0x20b   : > { %v1008_v16 = vrot.slane %v1007_v28, 7  ;;  %v922_v24 = vadd.f32 %v920_v42, %v912_v17  ;;  %v1092_v44 = vrot.slane %v2387_v27, 7 }
 0x20c   : > { %v858_v34 = vrot.slane %v847_v26, %v2190_v38  ;;  %v854_v47 = vrot.slane %v847_v26, %v2187_v36  ;;  %v862_v63 = vrot.slane %v847_v26, %v2363_v3  ;;  %v1073_v26 = vsel %vm601_vm3, %v2342_v15, %v1072_v30 }
 0x20d   : > { %v1009_v32 = vsel %vm429_vm0, %v1008_v16, %v1007_v28  ;;  %v1075_v15 = vadd.f32 %v1073_v26, %v1064_v23 }
 0x20e   : > { %v928_v46 = vpop.permute.xlu1 %927  ;;  %v2400_v51 = vpop.permute.xlu0 %1174  ;;  %865 = vrot.lane.b32.xlu1 %v858_v34, %s1947_s19  ;;  %863 = vrot.lane.b32.xlu0 %v854_v47, %s1947_s19  ;;  %v1001_v34 = vadd.f32 %v999_v18, %v991_v58  ;;  %v1158_v47 = vmul.f32 %v1157_v19, %v2230_v43  ;;  %v1093_v43 = vsel %vm623_vm5, %v1092_v44, %v2387_v27 }
 0x20f   : > { %v929_v7 = vrot.slane %v928_v46, 7  ;;  %v1176_v50 = vrot.slane %v2400_v51, 1  ;;  %v1085_v29 = vadd.f32 %v1083_v48, %v1075_v15 }
 0x210   : > { %v1011_v28 = vadd.f32 %v1009_v32, %v1001_v34 }
 0x211   : > { %v930_v21 = vsel %vm645_vm6, %v929_v7, %v928_v46  ;;  %v1177_v41 = vsel %vm612_vm4, %v2400_v51, %v1176_v50  ;;  %v1095_v35 = vadd.f32 %v1093_v43, %v1085_v29 }
 0x212   : > { %v1101_v10 = vpop.permute.xlu1 %1100  ;;  %v1017_v11 = vpop.permute.xlu0 %1016  ;;  %867 = vrot.lane.b32.xlu0 %v862_v63, %s1947_s19  ;;  %v932_v49 = vadd.f32 %v930_v21, %v922_v24  ;;  %s1420_s19 = scalar_lea.sflag [#allocation10], %s2127_s26 }
 0x213   : > { %v1018_v22 = vrot.slane %v1017_v11, 7  ;;  %v1102_v62 = vrot.slane %v1101_v10, 7 }
 0x215   : > { %v1019_v46 = vsel %vm645_vm6, %v1018_v22, %v1017_v11  ;;  %v1103_v12 = vsel %vm429_vm0, %v1102_v62, %v1101_v10  ;;  %v1169_v11 = vadd.f32 %v1167_v55, %v1158_v47 }
 0x216   : > { %v938_v25 = vpop.permute.xlu1 %937  ;;  %v1185_v20 = vpop.permute.xlu0 %1184  ;;  %v1021_v4 = vadd.f32 %v1019_v46, %v1011_v28  ;;  %v1105_v18 = vadd.f32 %v1103_v12, %v1095_v35 }
 0x217   : > { %v939_v61 = vrot.slane %v938_v25, 7  ;;  %v1186_v13 = vrot.slane %v1185_v20, 7  ;;  %v1179_v51 = vadd.f32 %v1177_v41, %v1169_v11 }
 0x219   : > { %v940_v52 = vsel %vm656_vm7, %v939_v61, %v938_v25  ;;  %v1187_v16 = vsel %vm623_vm5, %v1186_v13, %v1185_v20  ;;  %vm1147_vm5 = vcmask 375808  }
 0x21a   : > { %v942_v37 = vadd.f32 %v940_v52, %v932_v49  ;;  %v1111_v56 = vpop.permute.xlu1 %1110  ;;  %v1027_v45 = vpop.permute.xlu0 %1026  ;;  %v1189_v58 = vadd.f32 %v1187_v16, %v1179_v51 }
 0x21b   : > { %v1112_v63 = vrot.slane %v1111_v56, 7  ;;  %v1028_v0 = vrot.slane %v1027_v45, 7 }
 0x21c   : > { %v947_v7 = vrot.slane %v942_v37, %v2187_v36  ;;  %v951_v8 = vrot.slane %v942_v37, %v2190_v38  ;;  %v955_v10 = vrot.slane %v942_v37, %v2363_v3 }
 0x21d   : > { %v1029_v9 = vsel %vm656_vm7, %v1028_v0, %v1027_v45  ;;  %v1113_v14 = vsel %vm645_vm6, %v1112_v63, %v1111_v56 }
 0x21e   : > { %v1031_v30 = vadd.f32 %v1029_v9, %v1021_v4  ;;  %v1121_v27 = vpop.permute.xlu1 %1120  ;;  %v1195_v42 = vpop.permute.xlu0 %1194  ;;  %956 = vrot.lane.b32.xlu1 %v947_v7, %s1943_s20  ;;  %958 = vrot.lane.b32.xlu0 %v951_v8, %s1943_s20  ;;  %v1115_v23 = vadd.f32 %v1113_v14, %v1105_v18  ;;  %v563_v4 = vand.u32 127, %v499_v31 }
 0x21f   : > { %v1122_v17 = vrot.slane %v1121_v27, 7  ;;  %v1196_v40 = vrot.slane %v1195_v42, 7 }
 0x220   : > { %v1038_v19 = vrot.slane %v1031_v30, %v2187_v36  ;;  %v1042_v32 = vrot.slane %v1031_v30, %v2190_v38  ;;  %v1046_v61 = vrot.slane %v1031_v30, %v2363_v3  ;;  %v564_v7 = vadd.s32 128, %v563_v4 }
 0x221   : > { %v1123_v21 = vsel %vm656_vm7, %v1122_v17, %v1121_v27  ;;  %v1197_v22 = vsel %vm429_vm0, %v1196_v40, %v1195_v42  ;;  %v2465_v12 = vand.u32 15, %v563_v4 }
 0x222   : > { %v1215_v57 = vpop.permute.xlu1 %1214  ;;  %v1205_v24 = vpop.permute.xlu0 %1204  ;;  %960 = vrot.lane.b32.xlu1 %v955_v10, %s1943_s20  ;;  %1047 = vrot.lane.b32.xlu0 %v1038_v19, %s1948_s10  ;;  %v1125_v26 = vadd.f32 %v1123_v21, %v1115_v23  ;;  %v1199_v44 = vadd.f32 %v1197_v22, %v1189_v58  ;;  %s1949_s20 = smov 46  }
 0x223   : > { %v1216_v25 = vrot.slane %v1215_v57, 7  ;;  %v1206_v20 = vrot.slane %v1205_v24, 7  ;;  %vm754_vm11 = vcmp.ge.s32.totalorder %v2465_v12, 2  ;;  %vm660_vm13 = vcmp.ge.s32.totalorder %v2465_v12, 3 }
 0x224   : > { %v1132_v50 = vrot.slane %v1125_v26, %v2187_v36  ;;  %v1136_v62 = vrot.slane %v1125_v26, %v2190_v38  ;;  %v1140_v46 = vrot.slane %v1125_v26, %v2363_v3  ;;  %vm848_vm15 = vcmp.ge.s32.totalorder %v2465_v12, 1 }
 0x225   : > { %v1207_v34 = vsel %vm645_vm6, %v1206_v20, %v1205_v24  ;;  %v1217_v48 = vsel %vm656_vm7, %v1216_v25, %v1215_v57  ;;  %vm1032_vm3 = vcmp.lt.s32.totalorder %v2465_v12, 15  ;;  %vm1126_vm7 = vcmp.lt.s32.totalorder %v2465_v12, 14 }
 0x226   : > { %v1209_v47 = vadd.f32 %v1207_v34, %v1199_v44  ;;  %1049 = vrot.lane.b32.xlu1 %v1042_v32, %s1948_s10  ;;  %1051 = vrot.lane.b32.xlu0 %v1046_v61, %s1948_s10  ;;  %s1828_s10 = scalar_lea.vmem %s1451_s12, 32 }
 0x227   : > { %p1829_p12 = scmp.ne.s32.totalorder %s1451_s12, %s1828_s10 }
 0x228   : > { %v1219_v49 = vadd.f32 %v1217_v48, %v1209_v47 }
 0x229   : > { %p1830_p9 = pnand %p1829_p12, %p2658_p8 }
 0x22a   : > { %1141 = vrot.lane.b32.xlu1 %v1132_v50, %s1949_s20  ;;  %1143 = vrot.lane.b32.xlu0 %v1136_v62, %s1949_s20  ;;  %v1226_v52 = vrot.slane %v1219_v49, %v2187_v36  ;;  %v1230_v15 = vrot.slane %v1219_v49, %v2190_v38  ;;  %v1234_v55 = vrot.slane %v1219_v49, %v2363_v3  ;;  %v2467_v38 = vand.u32 15, %v564_v7 }
 0x22b   : > { %p1831_p10 = pneg %p1830_p9 }
 0x22c   : > { %vm755_vm12 = vcmp.ge.s32.totalorder %v2467_v38, 2  ;;  %vm661_vm14 = vcmp.ge.s32.totalorder %v2467_v38, 3  ;;  %vm849_vm0 = vcmp.ge.s32.totalorder %v2467_v38, 1  ;;  %vm1033_vm4 = vcmp.lt.s32.totalorder %v2467_v38, 15 }
 0x22e   : > { %1145 = vrot.lane.b32.xlu1 %v1140_v46, %s1949_s20  ;;  %1235 = vrot.lane.b32.xlu0 %v1226_v52, %s1950_s15  ;;  %s1951_s20 = smov [#allocation9]  }
 0x232   : > { %1237 = vrot.lane.b32.xlu1 %v1230_v15, %s1950_s15  ;;  %1239 = vrot.lane.b32.xlu0 %v1234_v55, %s1950_s15  ;;  %s1832_s15 = sshll.u32 %s1951_s20, 4  ;;  %s1833_s15 = int_to_ptr.vmem [resolvable:$false] %s1832_s15 }
 0x233   : > { %s1834_s14 = scalar_lea.vmem %s1833_s15, 64  ;;  %p1835_p1 = scmp.lt.s32.totalorder %s1451_s12, %s1833_s15 }
 0x234   : > { %p1836_p4 = scmp.lt.s32.totalorder %s1834_s14, %s1828_s10 }
 0x236   : > { %p1837_p11 = por %p1836_p4, %p1835_p1 }
 0x238   : > { %p1838_p0 = pnand %p1837_p11, %p1831_p10 }
 0x274   : > { %v676_v28 = vpop.permute.xlu0 %675  ;;  %v678_v37 = vpop.permute.xlu1 %677 }
 0x275   : > { %v682_v27 = vsel %vm681_vm9, %v676_v28, %v678_v37 }
 0x276   : > { %v686_v51 = vsel %vm660_vm13, %v682_v27, 0.0 }
 0x278   : > { %v680_v56 = vpop.permute.xlu0 %679  ;;  %v770_v45 = vpop.permute.xlu1 %769 }
 0x279   : > { %v683_v42 = vsel %vm681_vm9, %v678_v37, %v680_v56  ;;  %vm1220_vm9 = vcmp.lt.s32.totalorder %v2465_v12, 13 }
 0x27a   : > { %v687_v18 = vsel %vm661_vm14, %v683_v42, 0.0 }
 0x27c   : > { %v772_v43 = vpop.permute.xlu0 %771  ;;  %v774_v13 = vpop.permute.xlu1 %773 }
 0x27d   : > { %v776_v11 = vsel %vm775_vm8, %v770_v45, %v772_v43  ;;  %v777_v35 = vsel %vm775_vm8, %v772_v43, %v774_v13  ;;  %vm1127_vm8 = vcmp.lt.s32.totalorder %v2467_v38, 14 }
 0x27e   : > { %v780_v17 = vsel %vm754_vm11, %v776_v11, 0.0  ;;  %v781_v40 = vsel %vm755_vm12, %v777_v35, 0.0  ;;  %vm1300_vm11 = vcmask 15360  }
 0x27f   : > { %v782_v58 = vadd.f32 %v780_v17, %v686_v51  ;;  %v783_v23 = vadd.f32 %v781_v40, %v687_v18 }
 0x280   : > { %v864_v63 = vpop.permute.xlu0 %863  ;;  %v866_v0 = vpop.permute.xlu1 %865 }
 0x281   : > { %v870_v16 = vsel %vm869_vm10, %v864_v63, %v866_v0 }
 0x282   : > { %v874_v10 = vsel %vm848_vm15, %v870_v16, 0.0 }
 0x283   : > { %v876_v26 = vadd.f32 %v874_v10, %v782_v58 }
 0x284   : > { %v868_v29 = vpop.permute.xlu0 %867 }
 0x285   : > { %v871_v14 = vsel %vm869_vm10, %v866_v0, %v868_v29  ;;  %vm1221_vm10 = vcmp.lt.s32.totalorder %v2467_v38, 13 }
 0x286   : > { %v875_v19 = vsel %vm849_vm0, %v871_v14, 0.0 }
 0x287   : > { %v877_v44 = vadd.f32 %v875_v19, %v783_v23 }
 0x290   : > { %v957_v8 = vpop.permute.xlu1 %956  ;;  %v959_v41 = vpop.permute.xlu0 %958 }
 0x291   : > { %v962_v25 = vsel %vm645_vm6, %v957_v8, %v959_v41 }
 0x292   : > { %v966_v49 = vadd.f32 %v962_v25, %v876_v26 }
 0x294   : > { %v961_v3 = vpop.permute.xlu1 %960  ;;  %v1048_v9 = vpop.permute.xlu0 %1047 }
 0x295   : > { %v963_v20 = vsel %vm645_vm6, %v959_v41, %v961_v3  ;;  %vm1241_vm6 = vcmask 367616  }
 0x296   : > { %v967_v50 = vadd.f32 %v963_v20, %v877_v44  ;;  %v1294_v44 = vld [vmem:[%s2635_s4 + $0x10] sm:$0xff] }
 0x298   : > { %v1050_v31 = vpop.permute.xlu1 %1049  ;;  %v1052_v30 = vpop.permute.xlu0 %1051 }
 0x299   : > { %v1054_v57 = vsel %vm1053_vm1, %v1048_v9, %v1050_v31  ;;  %v1055_v24 = vsel %vm1053_vm1, %v1050_v31, %v1052_v30 }
 0x29a   : > { %v1058_v61 = vsel %vm1032_vm3, %v1054_v57, 0.0  ;;  %v1059_v34 = vsel %vm1033_vm4, %v1055_v24, 0.0  ;;  %v1292_v24 = vld [vmem:[%s2635_s4] sm:$0xff] }
 0x29b   : > { %v1060_v15 = vadd.f32 %v1058_v61, %v966_v49  ;;  %v1061_v55 = vadd.f32 %v1059_v34, %v967_v50 }
 0x29c   : > { %v1142_v21 = vpop.permute.xlu1 %1141  ;;  %v1144_v22 = vpop.permute.xlu0 %1143 }
 0x29d   : > { %v1148_v32 = vsel %vm1147_vm5, %v1142_v21, %v1144_v22 }
 0x29e   : > { %v1152_v46 = vsel %vm1126_vm7, %v1148_v32, 0.0  ;;  %v1295_v32 = vld [vmem:[%s2635_s4 + $0x18] sm:$0xff] }
 0x29f   : > { %v1154_v56 = vadd.f32 %v1152_v46, %v1060_v15 }
 0x2a0   : > { %v1146_v47 = vpop.permute.xlu1 %1145  ;;  %v1236_v48 = vpop.permute.xlu0 %1235 }
 0x2a1   : > { %v1149_v62 = vsel %vm1147_vm5, %v1144_v22, %v1146_v47 }
 0x2a2   : > { %v1153_v52 = vsel %vm1127_vm8, %v1149_v62, 0.0 }
 0x2a3   : > { %v1155_v45 = vadd.f32 %v1153_v52, %v1061_v55 }
 0x2a4   : > { %v1238_v28 = vpop.permute.xlu1 %1237  ;;  %v1240_v37 = vpop.permute.xlu0 %1239 }
 0x2a5   : > { %v1242_v43 = vsel %vm1241_vm6, %v1236_v48, %v1238_v28  ;;  %v1243_v13 = vsel %vm1241_vm6, %v1238_v28, %v1240_v37 }
 0x2a6   : > { %v1246_v63 = vsel %vm1220_vm9, %v1242_v43, 0.0  ;;  %v1247_v0 = vsel %vm1221_vm10, %v1243_v13, 0.0 }
 0x2a7   : > { %v1248_v29 = vadd.f32 %v1246_v63, %v1154_v56  ;;  %v1249_v4 = vadd.f32 %v1247_v0, %v1155_v45  ;;  %v1316_v63 = vld [vmem:[%s2636_s5 + $0x8] sm:$0xff]  ;;  %v1315_v0 = vld [vmem:[%s2636_s5] sm:$0xff] }
 0x2a9   : > { %v1641_v7 = vmul.f32 -1.442695, %v1248_v29  ;;  %v1642_v8 = vmul.f32 -1.442695, %v1249_v4  ;;  %v1318_v4 = vld [vmem:[%s2636_s5 + $0x18] sm:$0xff] }
 0x2ab   : > { %1759 = vpow2.f32 %v1641_v7  ;;  %v1317_v7 = vld [vmem:[%s2636_s5 + $0x10] sm:$0xff] }
 0x2ac   : > { %1761 = vpow2.f32 %v1642_v8 }
 0x2b5   : > { %v1760_v41 = vpop.eup %1759 }
 0x2b6   : > { %v1762_v3 = vpop.eup %1761  ;;  %v1256_v12 = vadd.f32 1.0, %v1760_v41 }
 0x2b7   : > { %v1257_v9 = vadd.f32 1.0, %v1762_v3 }
 0x2b8   : > { %1763 = vrcp.f32 %v1256_v12 }
 0x2b9   : > { %1765 = vrcp.f32 %v1257_v9 }
 0x2c2   : > { %v1764_v38 = vpop.eup %1763 }
 0x2c3   : > { %v1766_v11 = vpop.eup %1765  ;;  %v1262_v35 = vadd.f32 1.0, %v1764_v38 }
 0x2c4   : > { %v1263_v31 = vadd.f32 1.0, %v1766_v11  ;;  %v1397_v30 = vcombine.low %v1764_v38, %v1766_v11 }
 0x2c5   : > { %v1267_v27 = vrot.slane %v1262_v35, %v2187_v36 }
 0x2c6   : > { %v1271_v42 = vrot.slane %v1263_v31, %v2187_v36  ;;  %v1404_v16 = vrot.slane %v1397_v30, %v2219_v33 }
 0x2c7   : > { %v1274_v14 = vmul.f32 %v1267_v27, %v2204_v1  ;;  %v1272_v17 = vmul.f32 %v1267_v27, %v2194_v53  ;;  %v1276_v18 = vmul.f32 %v1267_v27, %v2196_v54  ;;  %v1278_v10 = vmul.f32 %v1267_v27, %v2206_v2 }
 0x2c8   : > { %v1275_v40 = vmul.f32 %v1271_v42, %v2210_v5  ;;  %v1273_v51 = vmul.f32 %v1271_v42, %v2198_v59  ;;  %v1411_v19 = vrot.slane %v1404_v16, %v2219_v33  ;;  %v1277_v36 = vmul.f32 %v1271_v42, %v2200_v60  ;;  %v1293_v33 = vld [vmem:[%s2635_s4 + $0x8] sm:$0xff] }
 0x2c9   : > { %v1279_v58 = vmul.f32 %v1271_v42, %v2212_v6 }
 0x2ca   : > { %v1283_v21 = vmax.f32 %v1274_v14, %v1275_v40  ;;  %v1280_v22 = vmax.f32 %v1272_v17, %v1273_v51  ;;  %1413 = vst.msk [vmem:[%s2510_s25] sm:$0x3] %vm2223_vm2, %v1411_v19  ;;  %v1286_v23 = vmax.f32 %v1276_v18, %v1277_v36 }
 0x2cb   : > { %v1289_v57 = vmax.f32 %v1278_v10, %v1279_v58 }
 0x2cc   : > { %1284 = vmax.xlane.f32.xlu0 %v1283_v21  ;;  %1281 = vmax.xlane.f32.xlu1 %v1280_v22 }
 0x2d0   : > { %1287 = vmax.xlane.f32.xlu0 %v1286_v23  ;;  %1290 = vmax.xlane.f32.xlu1 %v1289_v57 }
 0x359   : > { %v1285_v25 = vpop.xlane.xlu0 %1284  ;;  %v1282_v20 = vpop.xlane.xlu1 %1281 }
 0x35a   : > { %v1297_v39 = vmul.f32 %v1293_v33, %v1285_v25  ;;  %v1296_v26 = vmul.f32 %v1292_v24, %v1282_v20 }
 0x35c   : > { %v1302_v61 = vsel %vm1300_vm11, %v1297_v39, 0.0  ;;  %v1301_v34 = vsel %vm1300_vm11, %v1296_v26, 0.0 }
 0x35d   : > { %v1288_v47 = vpop.xlane.xlu0 %1287  ;;  %v1291_v48 = vpop.xlane.xlu1 %1290  ;;  %v1303_v62 = vadd.f32 %v1302_v61, %v1301_v34 }
 0x35e   : > { %v1298_v49 = vmul.f32 %v1294_v44, %v1288_v47  ;;  %v1299_v50 = vmul.f32 %v1295_v32, %v1291_v48 }
 0x360   : > { %v1304_v46 = vsel %vm1300_vm11, %v1298_v49, 0.0  ;;  %v1306_v15 = vsel %vm1300_vm11, %v1299_v50, 0.0 }
 0x361   : > { %v1305_v52 = vadd.f32 %v1304_v46, %v1303_v62 }
 0x363   : > { %v1307_v55 = vadd.f32 %v1306_v15, %v1305_v52 }
 0x365   : > { %v1308_v28 = vrot.slane %v1307_v55, 4 }
 0x367   : > { %v1309_v37 = vadd.f32 %v1308_v28, %v1307_v55 }
 0x369   : > { %v1310_v56 = vrot.slane %v1309_v37, 2 }
 0x36b   : > { %v1311_v45 = vadd.f32 %v1310_v56, %v1309_v37 }
 0x36d   : > { %v1312_v43 = vrot.slane %v1311_v45, 1 }
 0x36f   : > { %v1313_v13 = vadd.f32 %v1312_v43, %v1311_v45 }
 0x371   : > { %v1314_v29 = vmax.f32 %v1313_v13, 0.0 }
 0x373   : > { %v1320_v8 = vmul.f32 %v1316_v63, %v1314_v29  ;;  %v1319_v41 = vmul.f32 %v1315_v0, %v1314_v29  ;;  %v1322_v9 = vmul.f32 %v1318_v4, %v1314_v29  ;;  %v1321_v38 = vmul.f32 %v1317_v7, %v1314_v29 }
 0x375   : > { %v1326_v3 = vsel %vm1300_vm11, %v1320_v8, 0.0  ;;  %v1323_v12 = vsel %vm1300_vm11, %v1319_v41, 0.0  ;;  %v1332_v11 = vsel %vm1300_vm11, %v1322_v9, 0.0  ;;  %v1329_v35 = vsel %vm1300_vm11, %v1321_v38, 0.0 }
 0x376   : > { %1327 = vadd.xlane.f32.xlu1 %v1326_v3  ;;  %1324 = vadd.xlane.f32.xlu0 %v1323_v12 }
 0x37a   : > { %1333 = vadd.xlane.f32.xlu1 %v1332_v11  ;;  %1330 = vadd.xlane.f32.xlu0 %v1329_v35 }
 0x37b   : > { %1841 = shalt.err (!%p1838_p0)
}
 0x37c   : > { %s1842_s25 = scalar_lea.hbm %s2552_s16, 32  ;;  %s1846_s21 = scalar_lea.hbm %s2639_s8, 64 }
 0x37d   : > { %p1843_p2 = scmp.ne.s32.totalorder %s2552_s16, %s1842_s25  ;;  %p1847_p3 = scmp.lt.u32.totalorder %s2552_s16, %s2639_s8 }
 0x37e   : > { %p1848_p13 = scmp.lt.u32.totalorder %s1846_s21, %s1842_s25  ;;  %p1850_p12 = scmp.lt.u32.totalorder %s1842_s25, %s2552_s16 }
 0x37f   : > { %p1844_p7 = pnand %p1843_p2, %p2658_p8 }
 0x380   : > { %p1849_p5 = por %p1848_p13, %p1847_p3 }
 0x381   : > { %p1845_p6 = pneg %p1844_p7 }
 0x382   : > { %p1851_p9 = por %p1850_p12, %p1849_p5 }
 0x384   : > { %p1852_p10 = pnand %p1851_p9, %p1845_p6 }
 0x386   : > { %1855 = shalt.err (!%p1852_p10)
}
 0x387   : > { %1681 = dma.vmem_to_hbm [thread:$0]  (%p2658_p8), %s1451_s12, 32, %s2552_s16, %s1420_s19  }
 0x388   : > { %s1586_s12 = sshll.u32 %s2127_s26, 5  ;;  %s1664_s13 = sshll.u32 %s2021_s9, 9 }
 0x389   : > { %s354_s16 = scalar_lea.vmem [#allocation8], %s1586_s12  ;;  %s2585_s9 = scalar_lea.hbm %s2638_s7, %s1664_s13 }
 0x38a   : > { %s1433_s19 = sshll.u32 %s354_s16, 4  ;;  %s1415_s15 = scalar_lea.sflag [#allocation5], %s2127_s26  ;;  %s2587_s19 = int_to_ptr.vmem [resolvable:$true] %s1433_s19 }
 0x38b   : > { %s1856_s14 = scalar_lea.vmem %s2587_s19, 512  ;;  %s1952_s25 = smov [#allocation8]  }
 0x38c   : > { %p1857_p1 = scmp.ne.s32.totalorder %s2587_s19, %s1856_s14  ;;  %s1860_s22 = sshll.u32 %s1952_s25, 4  ;;  %s1861_s22 = int_to_ptr.vmem [resolvable:$false] %s1860_s22 }
 0x38d   : > { %s1862_s24 = scalar_lea.vmem %s1861_s22, 1024  ;;  %p1863_p0 = scmp.lt.s32.totalorder %s2587_s19, %s1861_s22 }
 0x38e   : > { %p1858_p4 = pnand %p1857_p1, %p2658_p8  ;;  %p1864_p2 = scmp.lt.s32.totalorder %s1862_s24, %s1856_s14 }
 0x390   : > { %p1859_p11 = pneg %p1858_p4  ;;  %p1865_p7 = por %p1864_p2, %p1863_p0 }
 0x392   : > { %p1866_p6 = pnand %p1865_p7, %p1859_p11 }
 0x403   : > { %v1328_v31 = vpop.xlane.xlu1 %1327  ;;  %v1325_v30 = vpop.xlane.xlu0 %1324 }
 0x404   : > { %v1644_v27 = vmul.f32 -1.442695, %v1328_v31  ;;  %v1643_v42 = vmul.f32 -1.442695, %v1325_v30 }
 0x406   : > { %1767 = vpow2.f32 %v1644_v27 }
 0x407   : > { %1769 = vpow2.f32 %v1643_v42  ;;  %v1334_v16 = vpop.xlane.xlu1 %1333  ;;  %v1331_v14 = vpop.xlane.xlu0 %1330 }
 0x408   : > { %v1646_v17 = vmul.f32 -1.442695, %v1334_v16  ;;  %v1645_v40 = vmul.f32 -1.442695, %v1331_v14 }
 0x40a   : > { %1771 = vpow2.f32 %v1646_v17 }
 0x40b   : > { %1773 = vpow2.f32 %v1645_v40 }
 0x410   : > { %v1768_v51 = vpop.eup %1767 }
 0x411   : > { %v1770_v18 = vpop.eup %1769  ;;  %v1348_v10 = vadd.f32 1.0, %v1768_v51 }
 0x412   : > { %v1347_v19 = vadd.f32 1.0, %v1770_v18 }
 0x413   : > { %1775 = vrcp.f32 %v1348_v10 }
 0x414   : > { %v1772_v21 = vpop.eup %1771  ;;  %1777 = vrcp.f32 %v1347_v19 }
 0x415   : > { %v1774_v22 = vpop.eup %1773  ;;  %v1350_v36 = vadd.f32 1.0, %v1772_v21 }
 0x416   : > { %v1349_v58 = vadd.f32 1.0, %v1774_v22 }
 0x417   : > { %1779 = vrcp.f32 %v1350_v36 }
 0x418   : > { %1781 = vrcp.f32 %v1349_v58 }
 0x41d   : > { %v1776_v23 = vpop.eup %1775 }
 0x41e   : > { %v1778_v57 = vpop.eup %1777  ;;  %v1361_v33 = vmul.f32 %v1776_v23, %v2204_v1  ;;  %v1362_v24 = vmul.f32 %v1776_v23, %v2210_v5 }
 0x41f   : > { %v1359_v25 = vmul.f32 %v1778_v57, %v2194_v53  ;;  %v1360_v20 = vmul.f32 %v1778_v57, %v2198_v59 }
 0x420   : > { %v1661_v39 = vpack.c.bf16 %v1362_v24, %v1361_v33 }
 0x421   : > { %v1780_v26 = vpop.eup %1779  ;;  %v1660_v44 = vpack.c.bf16 %v1360_v20, %v1359_v25 }
 0x422   : > { %v1782_v32 = vpop.eup %1781  ;;  %1392 = vst [vmem:[%s354_s16 + $0x8] sm:$0xff] %v1661_v39  ;;  %v1365_v61 = vmul.f32 %v1780_v26, %v2206_v2  ;;  %v1366_v1 = vmul.f32 %v1780_v26, %v2212_v6 }
 0x423   : > { %1391 = vst [vmem:[%s354_s16] sm:$0xff] %v1660_v44  ;;  %v1363_v5 = vmul.f32 %v1782_v32, %v2196_v54  ;;  %v1364_v53 = vmul.f32 %v1782_v32, %v2200_v60 }
 0x424   : > { %v1663_v59 = vpack.c.bf16 %v1366_v1, %v1365_v61 }
 0x425   : > { %v1662_v34 = vpack.c.bf16 %v1364_v53, %v1363_v5 }
 0x426   : > { %1394 = vst [vmem:[%s354_s16 + $0x18] sm:$0xff] %v1663_v59 }
 0x427   : > { %1393 = vst [vmem:[%s354_s16 + $0x10] sm:$0xff] %v1662_v34 }
 0x428   : > { %1869 = shalt.err (!%p1866_p6)
}
 0x429   : > { %s1870_s21 = scalar_lea.hbm %s2585_s9, 512  ;;  %s1874_s12 = scalar_lea.hbm %s2638_s7, 1024 }
 0x42a   : > { %p1871_p3 = scmp.ne.s32.totalorder %s2585_s9, %s1870_s21  ;;  %p1875_p12 = scmp.lt.u32.totalorder %s2585_s9, %s2638_s7 }
 0x42b   : > { %p1876_p9 = scmp.lt.u32.totalorder %s1874_s12, %s1870_s21  ;;  %p1878_p1 = scmp.lt.u32.totalorder %s1870_s21, %s2585_s9 }
 0x42c   : > { %p1872_p13 = pnand %p1871_p3, %p2658_p8 }
 0x42d   : > { %p1877_p10 = por %p1876_p9, %p1875_p12 }
 0x42e   : > { %p1873_p5 = pneg %p1872_p13 }
 0x42f   : > { %p1879_p4 = por %p1878_p1, %p1877_p10 }
 0x431   : > { %p1880_p11 = pnand %p1879_p4, %p1873_p5 }
 0x433   : > { %1883 = shalt.err (!%p1880_p11)
}
 0x434   : > { %s1953_s10 = smov 128   ;;  %s1954_s20 = smov 8  }
 0x435   : > { %1680 = dma.vmem_to_hbm [thread:$0]  (%p2658_p8), %s2587_s19, 512, %s2585_s9, %s1415_s15, %s1953_s10, %s1953_s10, %s1954_s20  }
 0x436 PF: > { %s1462_s14 = sand.u32 1, %s1918_s27   ;;  %p2659_p0 = scmp.ne.s32.totalorder %s2648_s18, 0 }
 0x437   : > { %p2660_p2 = scmp.ge.s32.totalorder %s1930_s30, 2  ;;  %s1463_s25 = scalar_lea.sflag [#allocation5], %s1462_s14 }
 0x439   : > { %p1693_p7 = pnand %p2660_p2, %p2659_p0 }
 0x43b   : > { %1909 = dma.done.wait (!%p1693_p7), %s1463_s25, 512  }
 0x43c   : > { %1911 = vsyncadd (!%p1693_p7), %s1463_s25, 4294966784  ;;  %s1472_s22 = scalar_lea.sflag [#allocation10], %s1462_s14 }
 0x43d   : > { %1913 = dma.done.wait (!%p1693_p7), %s1472_s22, 32  }
 0x43e   : > { %1915 = vsyncadd (!%p1693_p7), %s1472_s22, 4294967264  ;;  %s2661_s17 = sld [smem:[#allocation15_spill]]  ;;  %p26_p8 = scmp.ge.s32.totalorder %s2025_s11, 4  }
 0x43f   : > { %s2662_s27 = smov %s1922_s28  ;;  %s2663_s28 = smov %s1926_s29 }
 0x440   : > { %s2665_s30 = smov %s2025_s11  ;;  %28 = sbr.rel (!%p26_p8) target bundleno = 10 (0xa), region = 118 }
 0x444   : > { %s2664_s29 = smov %s2661_s17 }
 0x447   :  { %1477 = vsyncpa [#allocation4], 1 }
 0x448   :  { %1479 = vsyncpa [#allocation4 + $0x1], 1 }
 0x449   :  { %1480 = vsyncpa [#allocation5], 1 }
 0x44a   :  { %1482 = vsyncpa [#allocation5 + $0x1], 1 }
 0x44b   :  { %1483 = vsyncpa [#allocation10], 1 }
 0x44c   :  { %1485 = vsyncpa [#allocation10 + $0x1], 1 }
 0x44d   :  { %1486 = vsyncpa [#allocation6], 1 }
 0x44e   :  { %1488 = vsyncpa [#allocation6 + $0x1], 1 }

</bundles_post_ra>
